<compile_context>
chip_gen: v6e
topology: v6e:2x2x1
jax: 0.10.0
libtpu: 0.0.40
codegen_flags: <defaults>
</compile_context>

<pallas_src>
import functools
import math

import jax
import jax.numpy as jnp
from jax.experimental import pallas as pl
from jax.experimental.pallas import tpu as pltpu

# ----------------------------- model config ---------------------------------
D_MODEL = 128          # lane-dense toy size (real MBart uses 1024)
N_HEADS = 4            # head dim 32
D_FF = 256
N_LAYERS = 2
VOCAB = 64
MAX_POS = 64
POS_OFFSET = 2         # MBart learned-positional-embedding offset
LN_EPS = 1e-5


# --------------------------- fused Pallas kernel ------------------------------
def _textclip_kernel(*refs, n_heads, n_layers, has_head):
    """Whole encoder: emb-LN + n_layers pre-LN blocks + final LN + gather + head.

    Grid = (batch, layer).  The hidden state is resident in VMEM scratch across
    the (arbitrary) layer axis; outputs are written only at the last layer.
    """
    if has_head:
        (x_ref, mask_ref, onehot_ref,
         lne_g, lne_b, lnf_g, lnf_b,
         ln1_g, ln1_b, wq, bq, wk, bk, wv, bv, wo, bo,
         ln2_g, ln2_b, w1, b1, w2, b2, wh,
         txt_ref, head_ref, x_sc, neg_sc) = refs
    else:
        (x_ref, mask_ref, onehot_ref,
         lne_g, lne_b, lnf_g, lnf_b,
         ln1_g, ln1_b, wq, bq, wk, bk, wv, bv, wo, bo,
         ln2_g, ln2_b, w1, b1, w2, b2,
         txt_ref, head_ref, x_sc, neg_sc) = refs
        wh = None

    S, D = x_sc.shape
    H = n_heads
    dh = D // H
    scale = 1.0 / math.sqrt(dh)
    layer = pl.program_id(1)

    def layer_norm(v, g, b):
        mu = jnp.mean(v, axis=-1, keepdims=True)
        var = jnp.mean((v - mu) ** 2, axis=-1, keepdims=True)
        return (v - mu) * jax.lax.rsqrt(var + LN_EPS) * g + b

    # ---- first layer step: embedding LayerNorm + hoisted additive key mask ----
    @pl.when(layer == 0)
    def _():
        x_sc[...] = layer_norm(x_ref[...], lne_g[...], lne_b[...])
        neg_sc[...] = (mask_ref[...] - 1.0) * 1e9        # (1, S), 0 for keep / -1e9 for pad

    x = x_sc[...]                                        # (S, D) f32

    # ---- self-attention block (pre-LN), all heads batched ----
    h = layer_norm(x, ln1_g[...], ln1_b[...])
    hb = jnp.broadcast_to(h.astype(jnp.bfloat16)[None], (H, S, D))     # (H,S,D) bf16
    qh = jnp.einsum('hsd,hde->hse', hb, wq[...],
                    preferred_element_type=jnp.float32) + bq[...]      # (H,S,dh) f32
    kh = jnp.einsum('hsd,hde->hse', hb, wk[...],
                    preferred_element_type=jnp.float32) + bk[...]
    vh = jnp.einsum('hsd,hde->hse', hb, wv[...],
                    preferred_element_type=jnp.float32) + bv[...]
    qh = qh * scale

    sc = jnp.einsum('hqe,hke->hqk', qh.astype(jnp.bfloat16),
                    kh.astype(jnp.bfloat16),
                    preferred_element_type=jnp.float32)                # (H,S,S) f32
    sc = sc + neg_sc[...][:, None, :]                                  # key padding mask (f32)
    sc = sc - jnp.max(sc, axis=-1, keepdims=True)
    p = jnp.exp(sc)
    p = p * pl.reciprocal(jnp.sum(p, axis=-1, keepdims=True), approx=True)
    oh = jnp.einsum('hqk,hke->hqe', p.astype(jnp.bfloat16),
                    vh.astype(jnp.bfloat16),
                    preferred_element_type=jnp.float32)                # (H,S,dh)
    attn = jnp.einsum('hqe,hed->hqd', oh.astype(jnp.bfloat16), wo[...],
                      preferred_element_type=jnp.float32).sum(axis=0)  # (S,D)
    attn = attn + bo[...]
    x = x + attn

    # ---- feed-forward block (pre-LN) ----
    h2 = layer_norm(x, ln2_g[...], ln2_b[...])
    f = jnp.dot(h2.astype(jnp.bfloat16), w1[...],
                preferred_element_type=jnp.float32) + b1[...]
    # TODO(synk): MBart uses exact (erf) GELU; tanh approximation kept for Mosaic lowering safety.
    f = jax.nn.gelu(f, approximate=True)
    f = jnp.dot(f.astype(jnp.bfloat16), w2[...],
                preferred_element_type=jnp.float32) + b2[...]
    x = x + f
    x_sc[...] = x

    # ---- last layer step: final LN, argmax-position gather, lm_head ----
    @pl.when(layer == n_layers - 1)
    def _():
        tl = layer_norm(x, lnf_g[...], lnf_b[...])                     # (S, D)
        txt_ref[...] = tl
        # gather hidden state at argmax position via exact f32 one-hot matmul
        gathered = jnp.dot(onehot_ref[...], tl,
                           preferred_element_type=jnp.float32)         # (1, D)
        if has_head:
            head_ref[...] = jnp.dot(gathered.astype(jnp.bfloat16), wh[...],
                                    preferred_element_type=jnp.float32)
        else:
            head_ref[...] = gathered                                   # nn.Identity


# ------------------------------ wrapper --------------------------------------
def fused_text_encoder(x, mask3, onehot3, p, head_w):
    """x: (B,S,D) f32 embeddings (pre emb-LN); mask3/onehot3: (B,1,S) f32."""
    B, S, D = x.shape
    L = p['wq'].shape[0]
    H = N_HEADS
    dh = D // H
    F = p['w1'].shape[-1]
    has_head = head_w is not None
    P = head_w.shape[-1] if has_head else D

    bf = lambda a: a.astype(jnp.bfloat16)
    # one-time weight prep (== load-time): per-head layout + bf16 matmul operands
    wq_h = bf(p['wq'].reshape(L, D, H, dh).transpose(0, 2, 1, 3))   # (L,H,D,dh)
    wk_h = bf(p['wk'].reshape(L, D, H, dh).transpose(0, 2, 1, 3))
    wv_h = bf(p['wv'].reshape(L, D, H, dh).transpose(0, 2, 1, 3))
    wo_h = bf(p['wo'].reshape(L, H, dh, D))                         # (L,H,dh,D)
    bq_h = p['bq'].reshape(L, H, 1, dh)
    bk_h = p['bk'].reshape(L, H, 1, dh)
    bv_h = p['bv'].reshape(L, H, 1, dh)

    args = [x, mask3, onehot3,
            p['ln_emb_g'], p['ln_emb_b'], p['ln_f_g'], p['ln_f_b'],
            p['ln1_g'], p['ln1_b'],
            wq_h, bq_h, wk_h, bk_h, wv_h, bv_h,
            wo_h, p['bo'],
            p['ln2_g'], p['ln2_b'],
            bf(p['w1']), p['b1'], bf(p['w2']), p['b2']]
    if has_head:
        args.append(bf(head_w))

    def batch_spec(tail):          # one block per batch element, constant over layers
        zeros = (0,) * len(tail)
        return pl.BlockSpec((None,) + tail, lambda b, l: (b,) + zeros)

    def fixed_spec(shape):         # whole array, same block every step
        zeros = (0,) * len(shape)
        return pl.BlockSpec(shape, lambda b, l: zeros)

    def layer_spec(tail):          # stacked per-layer weights, indexed by layer axis
        zeros = (0,) * len(tail)
        return pl.BlockSpec((None,) + tail, lambda b, l: (l,) + zeros)

    in_specs = [
        batch_spec((S, D)),                                  # x
        batch_spec((1, S)),                                  # attention mask
        batch_spec((1, S)),                                  # argmax one-hot
        fixed_spec((1, D)), fixed_spec((1, D)),              # emb LN
        fixed_spec((1, D)), fixed_spec((1, D)),              # final LN
        layer_spec((1, D)), layer_spec((1, D)),              # ln1
        layer_spec((H, D, dh)), layer_spec((H, 1, dh)),      # wq, bq
        layer_spec((H, D, dh)), layer_spec((H, 1, dh)),      # wk, bk
        layer_spec((H, D, dh)), layer_spec((H, 1, dh)),      # wv, bv
        layer_spec((H, dh, D)), layer_spec((1, D)),          # wo, bo
        layer_spec((1, D)), layer_spec((1, D)),              # ln2
        layer_spec((D, F)), layer_spec((1, F)),              # w1, b1
        layer_spec((F, D)), layer_spec((1, D)),              # w2, b2
    ]
    if has_head:
        in_specs.append(fixed_spec((D, P)))                  # lm_head weight

    out_shape = (jax.ShapeDtypeStruct((B, S, D), jnp.float32),   # txt_logits
                 jax.ShapeDtypeStruct((B, 1, P), jnp.float32))   # gathered (+head)
    out_specs = (batch_spec((S, D)), batch_spec((1, P)))

    kernel = functools.partial(_textclip_kernel, n_heads=H,
                               n_layers=L, has_head=has_head)

    txt_logits, head_out = pl.pallas_call(
        kernel,
        grid=(B, L),
        in_specs=in_specs,
        out_specs=out_specs,
        out_shape=out_shape,
        scratch_shapes=[pltpu.VMEM((S, D), jnp.float32),     # resident hidden state
                        pltpu.VMEM((1, S), jnp.float32)],    # hoisted additive key mask
        compiler_params=pltpu.CompilerParams(
            dimension_semantics=("parallel", "arbitrary")),  # batch parallel (v7x 2 TCs)
    )(*args)
    return head_out[:, 0, :], txt_logits


# ------------------------------ parameters -----------------------------------
def make_head(key, inplanes, planes, head_type):
    if head_type == 'linear':
        return 0.02 * jax.random.normal(key, (inplanes, planes), jnp.float32)
    return None  # nn.Identity


def init_params(key):
    ks = jax.random.split(key, 8)
    nrm = lambda k, shape: 0.02 * jax.random.normal(k, shape, jnp.float32)
    L, D, F = N_LAYERS, D_MODEL, D_FF
    return {
        'embed_tokens': nrm(ks[0], (VOCAB, D)),
        'embed_positions': nrm(ks[1], (MAX_POS + POS_OFFSET, D)),
        'ln_emb_g': jnp.ones((1, D), jnp.float32),
        'ln_emb_b': jnp.zeros((1, D), jnp.float32),
        'ln_f_g': jnp.ones((1, D), jnp.float32),
        'ln_f_b': jnp.zeros((1, D), jnp.float32),
        # per-layer weights stacked on a leading layer axis
        'ln1_g': jnp.ones((L, 1, D), jnp.float32),
        'ln1_b': jnp.zeros((L, 1, D), jnp.float32),
        'wq': nrm(ks[2], (L, D, D)), 'bq': jnp.zeros((L, 1, D), jnp.float32),
        'wk': nrm(ks[3], (L, D, D)), 'bk': jnp.zeros((L, 1, D), jnp.float32),
        'wv': nrm(ks[4], (L, D, D)), 'bv': jnp.zeros((L, 1, D), jnp.float32),
        'wo': nrm(ks[5], (L, D, D)), 'bo': jnp.zeros((L, 1, D), jnp.float32),
        'ln2_g': jnp.ones((L, 1, D), jnp.float32),
        'ln2_b': jnp.zeros((L, 1, D), jnp.float32),
        'w1': nrm(ks[6], (L, D, F)), 'b1': jnp.zeros((L, 1, F), jnp.float32),
        'w2': nrm(ks[7], (L, F, D)), 'b2': jnp.zeros((L, 1, D), jnp.float32),
    }


# ------------------------------ forward ---------------------------------------
def text_clip_forward(params, head_w, input_ids, attention_mask):
    """Returns (lm_head(output), txt_logits), matching TextCLIP.forward."""
    B, S = input_ids.shape
    # glue: embedding gathers + argmax (turned into a one-hot for the in-kernel gather)
    x = params['embed_tokens'][input_ids] * math.sqrt(D_MODEL)
    x = x + params['embed_positions'][jnp.arange(S) + POS_OFFSET][None]
    mask3 = attention_mask.astype(jnp.float32)[:, None, :]             # (B,1,S)
    idx = jnp.argmax(input_ids, axis=-1)                               # (B,)
    onehot3 = jax.nn.one_hot(idx, S, dtype=jnp.float32)[:, None, :]    # (B,1,S)
    head_out, txt_logits = fused_text_encoder(x, mask3, onehot3, params, head_w)
    return head_out, txt_logits


# --------------------------------- main ---------------------------------------
if __name__ == "__main__":
    key = jax.random.PRNGKey(0)
    k_params, k_ids, k_head = jax.random.split(key, 3)

    params = init_params(k_params)
    # default head_type='identy' -> Identity (the linear path is also fused in-kernel)
    head_w = make_head(k_head, D_MODEL, D_MODEL, 'identy')

    B, S = 2, 8
    input_ids = jax.random.randint(k_ids, (B, S), 3, VOCAB, dtype=jnp.int32)
    # row 1 has two padding positions (MBart pad token id = 1, mask = 0)
    input_ids = input_ids.at[1, -2:].set(1)
    attention_mask = jnp.ones((B, S), jnp.int32).at[1, -2:].set(0)

    head_out, txt_logits = text_clip_forward(params, head_w,
                                             input_ids, attention_mask)
    jax.block_until_ready((head_out, txt_logits))

    assert head_out.shape == (B, D_MODEL)
    assert txt_logits.shape == (B, S, D_MODEL)
    print("KERNEL_OK")
</pallas_src>

<mosaic_0001>
module attributes {stable_mosaic.version = 11 : i64} {
  func.func @_textclip_kernel(%arg0: i32, %arg1: i32, %arg2: memref<1x8x128xf32, #tpu.memory_space<vmem>>, %arg3: memref<1x1x8xf32, #tpu.memory_space<vmem>>, %arg4: memref<1x1x8xf32, #tpu.memory_space<vmem>>, %arg5: memref<1x128xf32, #tpu.memory_space<vmem>>, %arg6: memref<1x128xf32, #tpu.memory_space<vmem>>, %arg7: memref<1x128xf32, #tpu.memory_space<vmem>>, %arg8: memref<1x128xf32, #tpu.memory_space<vmem>>, %arg9: memref<1x1x128xf32, #tpu.memory_space<vmem>>, %arg10: memref<1x1x128xf32, #tpu.memory_space<vmem>>, %arg11: memref<1x4x128x32xbf16, #tpu.memory_space<vmem>>, %arg12: memref<1x4x1x32xf32, #tpu.memory_space<vmem>>, %arg13: memref<1x4x128x32xbf16, #tpu.memory_space<vmem>>, %arg14: memref<1x4x1x32xf32, #tpu.memory_space<vmem>>, %arg15: memref<1x4x128x32xbf16, #tpu.memory_space<vmem>>, %arg16: memref<1x4x1x32xf32, #tpu.memory_space<vmem>>, %arg17: memref<1x4x32x128xbf16, #tpu.memory_space<vmem>>, %arg18: memref<1x1x128xf32, #tpu.memory_space<vmem>>, %arg19: memref<1x1x128xf32, #tpu.memory_space<vmem>>, %arg20: memref<1x1x128xf32, #tpu.memory_space<vmem>>, %arg21: memref<1x128x256xbf16, #tpu.memory_space<vmem>>, %arg22: memref<1x1x256xf32, #tpu.memory_space<vmem>>, %arg23: memref<1x256x128xbf16, #tpu.memory_space<vmem>>, %arg24: memref<1x1x128xf32, #tpu.memory_space<vmem>>, %arg25: memref<1x8x128xf32, #tpu.memory_space<vmem>>, %arg26: memref<1x1x128xf32, #tpu.memory_space<vmem>>, %arg27: memref<8x128xf32, #tpu.memory_space<vmem>>, %arg28: memref<1x8xf32, #tpu.memory_space<vmem>>) attributes {dimension_semantics = [#tpu.dimension_semantics<parallel>, #tpu.dimension_semantics<arbitrary>], iteration_bounds = array<i64: 2, 2>, scalar_prefetch = 0 : i64, scratch_operands = 2 : i64, tpu.core_type = #tpu.core_type<tc>, window_params = [{transform_indices = @transform_0, window_bounds = array<i64: 1, 8, 128>}, {transform_indices = @transform_1, window_bounds = array<i64: 1, 1, 8>}, {transform_indices = @transform_2, window_bounds = array<i64: 1, 1, 8>}, {pipeline_mode = #tpu.pipeline_mode<synchronous>, transform_indices = @transform_3, window_bounds = array<i64: 1, 128>}, {pipeline_mode = #tpu.pipeline_mode<synchronous>, transform_indices = @transform_4, window_bounds = array<i64: 1, 128>}, {pipeline_mode = #tpu.pipeline_mode<synchronous>, transform_indices = @transform_5, window_bounds = array<i64: 1, 128>}, {pipeline_mode = #tpu.pipeline_mode<synchronous>, transform_indices = @transform_6, window_bounds = array<i64: 1, 128>}, {transform_indices = @transform_7, window_bounds = array<i64: 1, 1, 128>}, {transform_indices = @transform_8, window_bounds = array<i64: 1, 1, 128>}, {transform_indices = @transform_9, window_bounds = array<i64: 1, 4, 128, 32>}, {transform_indices = @transform_10, window_bounds = array<i64: 1, 4, 1, 32>}, {transform_indices = @transform_11, window_bounds = array<i64: 1, 4, 128, 32>}, {transform_indices = @transform_12, window_bounds = array<i64: 1, 4, 1, 32>}, {transform_indices = @transform_13, window_bounds = array<i64: 1, 4, 128, 32>}, {transform_indices = @transform_14, window_bounds = array<i64: 1, 4, 1, 32>}, {transform_indices = @transform_15, window_bounds = array<i64: 1, 4, 32, 128>}, {transform_indices = @transform_16, window_bounds = array<i64: 1, 1, 128>}, {transform_indices = @transform_17, window_bounds = array<i64: 1, 1, 128>}, {transform_indices = @transform_18, window_bounds = array<i64: 1, 1, 128>}, {transform_indices = @transform_19, window_bounds = array<i64: 1, 128, 256>}, {transform_indices = @transform_20, window_bounds = array<i64: 1, 1, 256>}, {transform_indices = @transform_21, window_bounds = array<i64: 1, 256, 128>}, {transform_indices = @transform_22, window_bounds = array<i64: 1, 1, 128>}, {transform_indices = @transform_23, window_bounds = array<i64: 1, 8, 128>}, {transform_indices = @transform_24, window_bounds = array<i64: 1, 1, 128>}]} {
    %c0_i32 = arith.constant 0 : i32
    %0 = arith.cmpi eq, %arg1, %c0_i32 : i32
    %1 = arith.extui %0 : i1 to i32
    %c0_i32_0 = arith.constant 0 : i32
    %2 = arith.cmpi ne, %1, %c0_i32_0 : i32
    scf.if %2 {
      %c0_87 = arith.constant 0 : index
      %c0_88 = arith.constant 0 : index
      %c0_89 = arith.constant 0 : index
      %147 = vector.load %arg2[%c0_87, %c0_88, %c0_89] : memref<1x8x128xf32, #tpu.memory_space<vmem>>, vector<1x8x128xf32>
      %148 = vector.shape_cast %147 : vector<1x8x128xf32> to vector<8x128xf32>
      %c0_90 = arith.constant 0 : index
      %c0_91 = arith.constant 0 : index
      %149 = vector.load %arg5[%c0_90, %c0_91] : memref<1x128xf32, #tpu.memory_space<vmem>>, vector<1x128xf32>
      %c0_92 = arith.constant 0 : index
      %c0_93 = arith.constant 0 : index
      %150 = vector.load %arg6[%c0_92, %c0_93] : memref<1x128xf32, #tpu.memory_space<vmem>>, vector<1x128xf32>
      %cst_94 = arith.constant dense<0.000000e+00> : vector<8xf32>
      %151 = vector.multi_reduction <add>, %148, %cst_94 [1] : vector<8x128xf32> to vector<8xf32>
      %152 = vector.shape_cast %151 : vector<8xf32> to vector<8x1xf32>
      %cst_95 = arith.constant 1.280000e+02 : f32
      %153 = vector.broadcast %cst_95 : f32 to vector<8x1xf32>
      %154 = arith.divf %152, %153 : vector<8x1xf32>
      %155 = vector.broadcast %154 : vector<8x1xf32> to vector<8x128xf32>
      %156 = arith.subf %148, %155 : vector<8x128xf32>
      %157 = arith.mulf %156, %156 : vector<8x128xf32>
      %cst_96 = arith.constant dense<0.000000e+00> : vector<8xf32>
      %158 = vector.multi_reduction <add>, %157, %cst_96 [1] : vector<8x128xf32> to vector<8xf32>
      %159 = vector.shape_cast %158 : vector<8xf32> to vector<8x1xf32>
      %cst_97 = arith.constant 1.280000e+02 : f32
      %160 = vector.broadcast %cst_97 : f32 to vector<8x1xf32>
      %161 = arith.divf %159, %160 : vector<8x1xf32>
      %162 = vector.broadcast %154 : vector<8x1xf32> to vector<8x128xf32>
      %163 = arith.subf %148, %162 : vector<8x128xf32>
      %cst_98 = arith.constant 9.99999974E-6 : f32
      %164 = vector.broadcast %cst_98 : f32 to vector<8x1xf32>
      %165 = arith.addf %161, %164 : vector<8x1xf32>
      %166 = math.rsqrt %165 : vector<8x1xf32>
      %167 = vector.broadcast %166 : vector<8x1xf32> to vector<8x128xf32>
      %168 = arith.mulf %163, %167 : vector<8x128xf32>
      %169 = vector.broadcast %149 : vector<1x128xf32> to vector<8x128xf32>
      %170 = arith.mulf %168, %169 : vector<8x128xf32>
      %171 = vector.broadcast %150 : vector<1x128xf32> to vector<8x128xf32>
      %172 = arith.addf %170, %171 : vector<8x128xf32>
      %c0_99 = arith.constant 0 : index
      %c0_100 = arith.constant 0 : index
      %173 = vector.load %arg27[%c0_99, %c0_100] : memref<8x128xf32, #tpu.memory_space<vmem>>, vector<8x128xf32>
      tpu.vector_store %arg27[%c0_99, %c0_100], %172 {strides = array<i32>} : memref<8x128xf32, #tpu.memory_space<vmem>>, vector<8x128xf32>,
      %c0_101 = arith.constant 0 : index
      %c0_102 = arith.constant 0 : index
      %c0_103 = arith.constant 0 : index
      %174 = vector.load %arg3[%c0_101, %c0_102, %c0_103] : memref<1x1x8xf32, #tpu.memory_space<vmem>>, vector<1x1x8xf32>
      %175 = vector.shape_cast %174 : vector<1x1x8xf32> to vector<1x8xf32>
      %cst_104 = arith.constant 1.000000e+00 : f32
      %176 = vector.broadcast %cst_104 : f32 to vector<1x8xf32>
      %177 = arith.subf %175, %176 : vector<1x8xf32>
      %cst_105 = arith.constant 1.000000e+09 : f32
      %178 = vector.broadcast %cst_105 : f32 to vector<1x8xf32>
      %179 = arith.mulf %177, %178 : vector<1x8xf32>
      %c0_106 = arith.constant 0 : index
      %c0_107 = arith.constant 0 : index
      %180 = vector.load %arg28[%c0_106, %c0_107] : memref<1x8xf32, #tpu.memory_space<vmem>>, vector<1x8xf32>
      tpu.vector_store %arg28[%c0_106, %c0_107], %179 {strides = array<i32>} : memref<1x8xf32, #tpu.memory_space<vmem>>, vector<1x8xf32>,
    } else {
    }
    %c0 = arith.constant 0 : index
    %c0_1 = arith.constant 0 : index
    %3 = vector.load %arg27[%c0, %c0_1] : memref<8x128xf32, #tpu.memory_space<vmem>>, vector<8x128xf32>
    %c0_2 = arith.constant 0 : index
    %c0_3 = arith.constant 0 : index
    %c0_4 = arith.constant 0 : index
    %4 = vector.load %arg9[%c0_2, %c0_3, %c0_4] : memref<1x1x128xf32, #tpu.memory_space<vmem>>, vector<1x1x128xf32>
    %5 = vector.shape_cast %4 : vector<1x1x128xf32> to vector<1x128xf32>
    %c0_5 = arith.constant 0 : index
    %c0_6 = arith.constant 0 : index
    %c0_7 = arith.constant 0 : index
    %6 = vector.load %arg10[%c0_5, %c0_6, %c0_7] : memref<1x1x128xf32, #tpu.memory_space<vmem>>, vector<1x1x128xf32>
    %7 = vector.shape_cast %6 : vector<1x1x128xf32> to vector<1x128xf32>
    %cst = arith.constant dense<0.000000e+00> : vector<8xf32>
    %8 = vector.multi_reduction <add>, %3, %cst [1] : vector<8x128xf32> to vector<8xf32>
    %9 = vector.shape_cast %8 : vector<8xf32> to vector<8x1xf32>
    %cst_8 = arith.constant 1.280000e+02 : f32
    %10 = vector.broadcast %cst_8 : f32 to vector<8x1xf32>
    %11 = arith.divf %9, %10 : vector<8x1xf32>
    %12 = vector.broadcast %11 : vector<8x1xf32> to vector<8x128xf32>
    %13 = arith.subf %3, %12 : vector<8x128xf32>
    %14 = arith.mulf %13, %13 : vector<8x128xf32>
    %cst_9 = arith.constant dense<0.000000e+00> : vector<8xf32>
    %15 = vector.multi_reduction <add>, %14, %cst_9 [1] : vector<8x128xf32> to vector<8xf32>
    %16 = vector.shape_cast %15 : vector<8xf32> to vector<8x1xf32>
    %cst_10 = arith.constant 1.280000e+02 : f32
    %17 = vector.broadcast %cst_10 : f32 to vector<8x1xf32>
    %18 = arith.divf %16, %17 : vector<8x1xf32>
    %19 = vector.broadcast %11 : vector<8x1xf32> to vector<8x128xf32>
    %20 = arith.subf %3, %19 : vector<8x128xf32>
    %cst_11 = arith.constant 9.99999974E-6 : f32
    %21 = vector.broadcast %cst_11 : f32 to vector<8x1xf32>
    %22 = arith.addf %18, %21 : vector<8x1xf32>
    %23 = math.rsqrt %22 : vector<8x1xf32>
    %24 = vector.broadcast %23 : vector<8x1xf32> to vector<8x128xf32>
    %25 = arith.mulf %20, %24 : vector<8x128xf32>
    %26 = vector.broadcast %5 : vector<1x128xf32> to vector<8x128xf32>
    %27 = arith.mulf %25, %26 : vector<8x128xf32>
    %28 = vector.broadcast %7 : vector<1x128xf32> to vector<8x128xf32>
    %29 = arith.addf %27, %28 : vector<8x128xf32>
    %30 = arith.truncf %29 : vector<8x128xf32> to vector<8x128xbf16>
    %31 = vector.shape_cast %30 : vector<8x128xbf16> to vector<1x8x128xbf16>
    %32 = vector.shape_cast %31 : vector<1x8x128xbf16> to vector<1x8x128xbf16>
    %33 = vector.broadcast %32 : vector<1x8x128xbf16> to vector<4x8x128xbf16>
    %c0_12 = arith.constant 0 : index
    %c0_13 = arith.constant 0 : index
    %c0_14 = arith.constant 0 : index
    %c0_15 = arith.constant 0 : index
    %34 = vector.load %arg11[%c0_12, %c0_13, %c0_14, %c0_15] : memref<1x4x128x32xbf16, #tpu.memory_space<vmem>>, vector<1x4x128x32xbf16>
    %35 = vector.shape_cast %34 : vector<1x4x128x32xbf16> to vector<4x128x32xbf16>
    "tpu.trace_start"() <{level = 10 : i32, message = "hsd,hde->hse"}> : () -> ()
    %cst_16 = arith.constant dense<0.000000e+00> : vector<4x8x32xf32>
    %36 = tpu.matmul %33, %35, %cst_16 {dimension_numbers = #tpu.dot_dimension_numbers<[2], [1], [1], [2], [0, 0, 0, 1, 1, 2], [0], [0]>} : vector<4x8x128xbf16>, vector<4x128x32xbf16>, vector<4x8x32xf32> -> vector<4x8x32xf32>
    "tpu.trace_stop"() : () -> ()
    %c0_17 = arith.constant 0 : index
    %c0_18 = arith.constant 0 : index
    %c0_19 = arith.constant 0 : index
    %c0_20 = arith.constant 0 : index
    %37 = vector.load %arg12[%c0_17, %c0_18, %c0_19, %c0_20] : memref<1x4x1x32xf32, #tpu.memory_space<vmem>>, vector<1x4x1x32xf32>
    %38 = vector.shape_cast %37 : vector<1x4x1x32xf32> to vector<4x1x32xf32>
    %39 = vector.broadcast %38 : vector<4x1x32xf32> to vector<4x8x32xf32>
    %40 = arith.addf %36, %39 : vector<4x8x32xf32>
    %c0_21 = arith.constant 0 : index
    %c0_22 = arith.constant 0 : index
    %c0_23 = arith.constant 0 : index
    %c0_24 = arith.constant 0 : index
    %41 = vector.load %arg13[%c0_21, %c0_22, %c0_23, %c0_24] : memref<1x4x128x32xbf16, #tpu.memory_space<vmem>>, vector<1x4x128x32xbf16>
    %42 = vector.shape_cast %41 : vector<1x4x128x32xbf16> to vector<4x128x32xbf16>
    "tpu.trace_start"() <{level = 10 : i32, message = "hsd,hde->hse"}> : () -> ()
    %cst_25 = arith.constant dense<0.000000e+00> : vector<4x8x32xf32>
    %43 = tpu.matmul %33, %42, %cst_25 {dimension_numbers = #tpu.dot_dimension_numbers<[2], [1], [1], [2], [0, 0, 0, 1, 1, 2], [0], [0]>} : vector<4x8x128xbf16>, vector<4x128x32xbf16>, vector<4x8x32xf32> -> vector<4x8x32xf32>
    "tpu.trace_stop"() : () -> ()
    %c0_26 = arith.constant 0 : index
    %c0_27 = arith.constant 0 : index
    %c0_28 = arith.constant 0 : index
    %c0_29 = arith.constant 0 : index
    %44 = vector.load %arg14[%c0_26, %c0_27, %c0_28, %c0_29] : memref<1x4x1x32xf32, #tpu.memory_space<vmem>>, vector<1x4x1x32xf32>
    %45 = vector.shape_cast %44 : vector<1x4x1x32xf32> to vector<4x1x32xf32>
    %46 = vector.broadcast %45 : vector<4x1x32xf32> to vector<4x8x32xf32>
    %47 = arith.addf %43, %46 : vector<4x8x32xf32>
    %c0_30 = arith.constant 0 : index
    %c0_31 = arith.constant 0 : index
    %c0_32 = arith.constant 0 : index
    %c0_33 = arith.constant 0 : index
    %48 = vector.load %arg15[%c0_30, %c0_31, %c0_32, %c0_33] : memref<1x4x128x32xbf16, #tpu.memory_space<vmem>>, vector<1x4x128x32xbf16>
    %49 = vector.shape_cast %48 : vector<1x4x128x32xbf16> to vector<4x128x32xbf16>
    "tpu.trace_start"() <{level = 10 : i32, message = "hsd,hde->hse"}> : () -> ()
    %cst_34 = arith.constant dense<0.000000e+00> : vector<4x8x32xf32>
    %50 = tpu.matmul %33, %49, %cst_34 {dimension_numbers = #tpu.dot_dimension_numbers<[2], [1], [1], [2], [0, 0, 0, 1, 1, 2], [0], [0]>} : vector<4x8x128xbf16>, vector<4x128x32xbf16>, vector<4x8x32xf32> -> vector<4x8x32xf32>
    "tpu.trace_stop"() : () -> ()
    %c0_35 = arith.constant 0 : index
    %c0_36 = arith.constant 0 : index
    %c0_37 = arith.constant 0 : index
    %c0_38 = arith.constant 0 : index
    %51 = vector.load %arg16[%c0_35, %c0_36, %c0_37, %c0_38] : memref<1x4x1x32xf32, #tpu.memory_space<vmem>>, vector<1x4x1x32xf32>
    %52 = vector.shape_cast %51 : vector<1x4x1x32xf32> to vector<4x1x32xf32>
    %53 = vector.broadcast %52 : vector<4x1x32xf32> to vector<4x8x32xf32>
    %54 = arith.addf %50, %53 : vector<4x8x32xf32>
    %cst_39 = arith.constant 0.176776692 : f32
    %55 = vector.broadcast %cst_39 : f32 to vector<4x8x32xf32>
    %56 = arith.mulf %40, %55 : vector<4x8x32xf32>
    %57 = arith.truncf %56 : vector<4x8x32xf32> to vector<4x8x32xbf16>
    %58 = arith.truncf %47 : vector<4x8x32xf32> to vector<4x8x32xbf16>
    "tpu.trace_start"() <{level = 10 : i32, message = "hqe,hke->hqk"}> : () -> ()
    %cst_40 = arith.constant dense<0.000000e+00> : vector<4x8x8xf32>
    %59 = tpu.matmul %57, %58, %cst_40 {dimension_numbers = #tpu.dot_dimension_numbers<[2], [2], [1], [1], [0, 0, 0, 1, 1, 1], [0], [0]>} : vector<4x8x32xbf16>, vector<4x8x32xbf16>, vector<4x8x8xf32> -> vector<4x8x8xf32>
    "tpu.trace_stop"() : () -> ()
    %c0_41 = arith.constant 0 : index
    %c0_42 = arith.constant 0 : index
    %60 = vector.load %arg28[%c0_41, %c0_42] : memref<1x8xf32, #tpu.memory_space<vmem>>, vector<1x8xf32>
    %61 = vector.shape_cast %60 : vector<1x8xf32> to vector<1x1x8xf32>
    %62 = vector.broadcast %61 : vector<1x1x8xf32> to vector<4x8x8xf32>
    %63 = arith.addf %59, %62 : vector<4x8x8xf32>
    %cst_43 = arith.constant dense<0xFF800000> : vector<4x8xf32>
    %64 = vector.multi_reduction <maximumf>, %63, %cst_43 [2] : vector<4x8x8xf32> to vector<4x8xf32>
    %65 = vector.shape_cast %64 : vector<4x8xf32> to vector<4x8x1xf32>
    %66 = vector.broadcast %65 : vector<4x8x1xf32> to vector<4x8x8xf32>
    %67 = arith.subf %63, %66 : vector<4x8x8xf32>
    %68 = math.exp %67 : vector<4x8x8xf32>
    %cst_44 = arith.constant dense<0.000000e+00> : vector<4x8xf32>
    %69 = vector.multi_reduction <add>, %68, %cst_44 [2] : vector<4x8x8xf32> to vector<4x8xf32>
    %70 = vector.shape_cast %69 : vector<4x8xf32> to vector<4x8x1xf32>
    %71 = tpu.reciprocal %70 {approx = true} : vector<4x8x1xf32> -> vector<4x8x1xf32>
    %72 = vector.broadcast %71 : vector<4x8x1xf32> to vector<4x8x8xf32>
    %73 = arith.mulf %68, %72 : vector<4x8x8xf32>
    %74 = arith.truncf %73 : vector<4x8x8xf32> to vector<4x8x8xbf16>
    %75 = arith.truncf %54 : vector<4x8x32xf32> to vector<4x8x32xbf16>
    "tpu.trace_start"() <{level = 10 : i32, message = "hqk,hke->hqe"}> : () -> ()
    %cst_45 = arith.constant dense<0.000000e+00> : vector<4x8x32xf32>
    %76 = tpu.matmul %74, %75, %cst_45 {dimension_numbers = #tpu.dot_dimension_numbers<[2], [1], [1], [2], [0, 0, 0, 1, 1, 2], [0], [0]>} : vector<4x8x8xbf16>, vector<4x8x32xbf16>, vector<4x8x32xf32> -> vector<4x8x32xf32>
    "tpu.trace_stop"() : () -> ()
    %77 = arith.truncf %76 : vector<4x8x32xf32> to vector<4x8x32xbf16>
    %c0_46 = arith.constant 0 : index
    %c0_47 = arith.constant 0 : index
    %c0_48 = arith.constant 0 : index
    %c0_49 = arith.constant 0 : index
    %78 = vector.load %arg17[%c0_46, %c0_47, %c0_48, %c0_49] : memref<1x4x32x128xbf16, #tpu.memory_space<vmem>>, vector<1x4x32x128xbf16>
    %79 = vector.shape_cast %78 : vector<1x4x32x128xbf16> to vector<4x32x128xbf16>
    "tpu.trace_start"() <{level = 10 : i32, message = "hqe,hed->hqd"}> : () -> ()
    %cst_50 = arith.constant dense<0.000000e+00> : vector<4x8x128xf32>
    %80 = tpu.matmul %77, %79, %cst_50 {dimension_numbers = #tpu.dot_dimension_numbers<[2], [1], [1], [2], [0, 0, 0, 1, 1, 2], [0], [0]>} : vector<4x8x32xbf16>, vector<4x32x128xbf16>, vector<4x8x128xf32> -> vector<4x8x128xf32>
    "tpu.trace_stop"() : () -> ()
    %cst_51 = arith.constant dense<0.000000e+00> : vector<8x128xf32>
    %81 = vector.multi_reduction <add>, %80, %cst_51 [0] : vector<4x8x128xf32> to vector<8x128xf32>
    %c0_52 = arith.constant 0 : index
    %c0_53 = arith.constant 0 : index
    %c0_54 = arith.constant 0 : index
    %82 = vector.load %arg18[%c0_52, %c0_53, %c0_54] : memref<1x1x128xf32, #tpu.memory_space<vmem>>, vector<1x1x128xf32>
    %83 = vector.shape_cast %82 : vector<1x1x128xf32> to vector<1x128xf32>
    %84 = vector.broadcast %83 : vector<1x128xf32> to vector<8x128xf32>
    %85 = arith.addf %81, %84 : vector<8x128xf32>
    %86 = arith.addf %3, %85 : vector<8x128xf32>
    %c0_55 = arith.constant 0 : index
    %c0_56 = arith.constant 0 : index
    %c0_57 = arith.constant 0 : index
    %87 = vector.load %arg19[%c0_55, %c0_56, %c0_57] : memref<1x1x128xf32, #tpu.memory_space<vmem>>, vector<1x1x128xf32>
    %88 = vector.shape_cast %87 : vector<1x1x128xf32> to vector<1x128xf32>
    %c0_58 = arith.constant 0 : index
    %c0_59 = arith.constant 0 : index
    %c0_60 = arith.constant 0 : index
    %89 = vector.load %arg20[%c0_58, %c0_59, %c0_60] : memref<1x1x128xf32, #tpu.memory_space<vmem>>, vector<1x1x128xf32>
    %90 = vector.shape_cast %89 : vector<1x1x128xf32> to vector<1x128xf32>
    %cst_61 = arith.constant dense<0.000000e+00> : vector<8xf32>
    %91 = vector.multi_reduction <add>, %86, %cst_61 [1] : vector<8x128xf32> to vector<8xf32>
    %92 = vector.shape_cast %91 : vector<8xf32> to vector<8x1xf32>
    %cst_62 = arith.constant 1.280000e+02 : f32
    %93 = vector.broadcast %cst_62 : f32 to vector<8x1xf32>
    %94 = arith.divf %92, %93 : vector<8x1xf32>
    %95 = vector.broadcast %94 : vector<8x1xf32> to vector<8x128xf32>
    %96 = arith.subf %86, %95 : vector<8x128xf32>
    %97 = arith.mulf %96, %96 : vector<8x128xf32>
    %cst_63 = arith.constant dense<0.000000e+00> : vector<8xf32>
    %98 = vector.multi_reduction <add>, %97, %cst_63 [1] : vector<8x128xf32> to vector<8xf32>
    %99 = vector.shape_cast %98 : vector<8xf32> to vector<8x1xf32>
    %cst_64 = arith.constant 1.280000e+02 : f32
    %100 = vector.broadcast %cst_64 : f32 to vector<8x1xf32>
    %101 = arith.divf %99, %100 : vector<8x1xf32>
    %102 = vector.broadcast %94 : vector<8x1xf32> to vector<8x128xf32>
    %103 = arith.subf %86, %102 : vector<8x128xf32>
    %cst_65 = arith.constant 9.99999974E-6 : f32
    %104 = vector.broadcast %cst_65 : f32 to vector<8x1xf32>
    %105 = arith.addf %101, %104 : vector<8x1xf32>
    %106 = math.rsqrt %105 : vector<8x1xf32>
    %107 = vector.broadcast %106 : vector<8x1xf32> to vector<8x128xf32>
    %108 = arith.mulf %103, %107 : vector<8x128xf32>
    %109 = vector.broadcast %88 : vector<1x128xf32> to vector<8x128xf32>
    %110 = arith.mulf %108, %109 : vector<8x128xf32>
    %111 = vector.broadcast %90 : vector<1x128xf32> to vector<8x128xf32>
    %112 = arith.addf %110, %111 : vector<8x128xf32>
    %113 = arith.truncf %112 : vector<8x128xf32> to vector<8x128xbf16>
    %c0_66 = arith.constant 0 : index
    %c0_67 = arith.constant 0 : index
    %c0_68 = arith.constant 0 : index
    %114 = vector.load %arg21[%c0_66, %c0_67, %c0_68] : memref<1x128x256xbf16, #tpu.memory_space<vmem>>, vector<1x128x256xbf16>
    %115 = vector.shape_cast %114 : vector<1x128x256xbf16> to vector<128x256xbf16>
    %cst_69 = arith.constant dense<0.000000e+00> : vector<8x256xf32>
    %116 = tpu.matmul %113, %115, %cst_69 {dimension_numbers = #tpu.dot_dimension_numbers<[1], [0], [0], [1], [0, 0, 1, 1], [], []>} : vector<8x128xbf16>, vector<128x256xbf16>, vector<8x256xf32> -> vector<8x256xf32>
    %c0_70 = arith.constant 0 : index
    %c0_71 = arith.constant 0 : index
    %c0_72 = arith.constant 0 : index
    %117 = vector.load %arg22[%c0_70, %c0_71, %c0_72] : memref<1x1x256xf32, #tpu.memory_space<vmem>>, vector<1x1x256xf32>
    %118 = vector.shape_cast %117 : vector<1x1x256xf32> to vector<1x256xf32>
    %119 = vector.broadcast %118 : vector<1x256xf32> to vector<8x256xf32>
    %120 = arith.addf %116, %119 : vector<8x256xf32>
    %121 = arith.mulf %120, %120 : vector<8x256xf32>
    %122 = arith.mulf %120, %121 : vector<8x256xf32>
    %cst_73 = arith.constant 4.471500e-02 : f32
    %123 = vector.broadcast %cst_73 : f32 to vector<8x256xf32>
    %124 = arith.mulf %123, %122 : vector<8x256xf32>
    %125 = arith.addf %120, %124 : vector<8x256xf32>
    %cst_74 = arith.constant 0.797884583 : f32
    %126 = vector.broadcast %cst_74 : f32 to vector<8x256xf32>
    %127 = arith.mulf %126, %125 : vector<8x256xf32>
    %128 = math.tanh %127 : vector<8x256xf32>
    %cst_75 = arith.constant 1.000000e+00 : f32
    %129 = vector.broadcast %cst_75 : f32 to vector<8x256xf32>
    %130 = arith.addf %129, %128 : vector<8x256xf32>
    %cst_76 = arith.constant 5.000000e-01 : f32
    %131 = vector.broadcast %cst_76 : f32 to vector<8x256xf32>
    %132 = arith.mulf %131, %130 : vector<8x256xf32>
    %133 = arith.mulf %120, %132 : vector<8x256xf32>
    %134 = arith.truncf %133 : vector<8x256xf32> to vector<8x256xbf16>
    %c0_77 = arith.constant 0 : index
    %c0_78 = arith.constant 0 : index
    %c0_79 = arith.constant 0 : index
    %135 = vector.load %arg23[%c0_77, %c0_78, %c0_79] : memref<1x256x128xbf16, #tpu.memory_space<vmem>>, vector<1x256x128xbf16>
    %136 = vector.shape_cast %135 : vector<1x256x128xbf16> to vector<256x128xbf16>
    %cst_80 = arith.constant dense<0.000000e+00> : vector<8x128xf32>
    %137 = tpu.matmul %134, %136, %cst_80 {dimension_numbers = #tpu.dot_dimension_numbers<[1], [0], [0], [1], [0, 0, 1, 1], [], []>} : vector<8x256xbf16>, vector<256x128xbf16>, vector<8x128xf32> -> vector<8x128xf32>
    %c0_81 = arith.constant 0 : index
    %c0_82 = arith.constant 0 : index
    %c0_83 = arith.constant 0 : index
    %138 = vector.load %arg24[%c0_81, %c0_82, %c0_83] : memref<1x1x128xf32, #tpu.memory_space<vmem>>, vector<1x1x128xf32>
    %139 = vector.shape_cast %138 : vector<1x1x128xf32> to vector<1x128xf32>
    %140 = vector.broadcast %139 : vector<1x128xf32> to vector<8x128xf32>
    %141 = arith.addf %137, %140 : vector<8x128xf32>
    %142 = arith.addf %86, %141 : vector<8x128xf32>
    %c0_84 = arith.constant 0 : index
    %c0_85 = arith.constant 0 : index
    %143 = vector.load %arg27[%c0_84, %c0_85] : memref<8x128xf32, #tpu.memory_space<vmem>>, vector<8x128xf32>
    tpu.vector_store %arg27[%c0_84, %c0_85], %142 {strides = array<i32>} : memref<8x128xf32, #tpu.memory_space<vmem>>, vector<8x128xf32>,
    %c1_i32 = arith.constant 1 : i32
    %144 = arith.cmpi eq, %arg1, %c1_i32 : i32
    %145 = arith.extui %144 : i1 to i32
    %c0_i32_86 = arith.constant 0 : i32
    %146 = arith.cmpi ne, %145, %c0_i32_86 : i32
    scf.if %146 {
      %c0_87 = arith.constant 0 : index
      %c0_88 = arith.constant 0 : index
      %147 = vector.load %arg7[%c0_87, %c0_88] : memref<1x128xf32, #tpu.memory_space<vmem>>, vector<1x128xf32>
      %c0_89 = arith.constant 0 : index
      %c0_90 = arith.constant 0 : index
      %148 = vector.load %arg8[%c0_89, %c0_90] : memref<1x128xf32, #tpu.memory_space<vmem>>, vector<1x128xf32>
      %cst_91 = arith.constant dense<0.000000e+00> : vector<8xf32>
      %149 = vector.multi_reduction <add>, %142, %cst_91 [1] : vector<8x128xf32> to vector<8xf32>
      %150 = vector.shape_cast %149 : vector<8xf32> to vector<8x1xf32>
      %cst_92 = arith.constant 1.280000e+02 : f32
      %151 = vector.broadcast %cst_92 : f32 to vector<8x1xf32>
      %152 = arith.divf %150, %151 : vector<8x1xf32>
      %153 = vector.broadcast %152 : vector<8x1xf32> to vector<8x128xf32>
      %154 = arith.subf %142, %153 : vector<8x128xf32>
      %155 = arith.mulf %154, %154 : vector<8x128xf32>
      %cst_93 = arith.constant dense<0.000000e+00> : vector<8xf32>
      %156 = vector.multi_reduction <add>, %155, %cst_93 [1] : vector<8x128xf32> to vector<8xf32>
      %157 = vector.shape_cast %156 : vector<8xf32> to vector<8x1xf32>
      %cst_94 = arith.constant 1.280000e+02 : f32
      %158 = vector.broadcast %cst_94 : f32 to vector<8x1xf32>
      %159 = arith.divf %157, %158 : vector<8x1xf32>
      %160 = vector.broadcast %152 : vector<8x1xf32> to vector<8x128xf32>
      %161 = arith.subf %142, %160 : vector<8x128xf32>
      %cst_95 = arith.constant 9.99999974E-6 : f32
      %162 = vector.broadcast %cst_95 : f32 to vector<8x1xf32>
      %163 = arith.addf %159, %162 : vector<8x1xf32>
      %164 = math.rsqrt %163 : vector<8x1xf32>
      %165 = vector.broadcast %164 : vector<8x1xf32> to vector<8x128xf32>
      %166 = arith.mulf %161, %165 : vector<8x128xf32>
      %167 = vector.broadcast %147 : vector<1x128xf32> to vector<8x128xf32>
      %168 = arith.mulf %166, %167 : vector<8x128xf32>
      %169 = vector.broadcast %148 : vector<1x128xf32> to vector<8x128xf32>
      %170 = arith.addf %168, %169 : vector<8x128xf32>
      %c0_96 = arith.constant 0 : index
      %c0_97 = arith.constant 0 : index
      %c0_98 = arith.constant 0 : index
      %171 = vector.load %arg25[%c0_96, %c0_97, %c0_98] : memref<1x8x128xf32, #tpu.memory_space<vmem>>, vector<1x8x128xf32>
      %172 = vector.shape_cast %171 : vector<1x8x128xf32> to vector<8x128xf32>
      %173 = vector.shape_cast %170 : vector<8x128xf32> to vector<1x8x128xf32>
      tpu.vector_store %arg25[%c0_96, %c0_97, %c0_98], %173 {strides = array<i32>} : memref<1x8x128xf32, #tpu.memory_space<vmem>>, vector<1x8x128xf32>,
      %c0_99 = arith.constant 0 : index
      %c0_100 = arith.constant 0 : index
      %c0_101 = arith.constant 0 : index
      %174 = vector.load %arg4[%c0_99, %c0_100, %c0_101] : memref<1x1x8xf32, #tpu.memory_space<vmem>>, vector<1x1x8xf32>
      %175 = vector.shape_cast %174 : vector<1x1x8xf32> to vector<1x8xf32>
      %cst_102 = arith.constant dense<0.000000e+00> : vector<1x128xf32>
      %176 = tpu.matmul %175, %170, %cst_102 {dimension_numbers = #tpu.dot_dimension_numbers<[1], [0], [0], [1], [0, 0, 1, 1], [], []>} : vector<1x8xf32>, vector<8x128xf32>, vector<1x128xf32> -> vector<1x128xf32>
      %c0_103 = arith.constant 0 : index
      %c0_104 = arith.constant 0 : index
      %c0_105 = arith.constant 0 : index
      %177 = vector.load %arg26[%c0_103, %c0_104, %c0_105] : memref<1x1x128xf32, #tpu.memory_space<vmem>>, vector<1x1x128xf32>
      %178 = vector.shape_cast %177 : vector<1x1x128xf32> to vector<1x128xf32>
      %179 = vector.shape_cast %176 : vector<1x128xf32> to vector<1x1x128xf32>
      tpu.vector_store %arg26[%c0_103, %c0_104, %c0_105], %179 {strides = array<i32>} : memref<1x1x128xf32, #tpu.memory_space<vmem>>, vector<1x1x128xf32>,
    } else {
    }
    return
  }
  func.func @transform_0(%arg0: i32, %arg1: i32) -> (i32, i32, i32) {
    %c0_i32 = arith.constant 0 : i32
    %c0_i32_0 = arith.constant 0 : i32
    %c0_i32_1 = arith.constant 0 : i32
    return %arg0, %c0_i32, %c0_i32_0 : i32, i32, i32
  }
  func.func @transform_1(%arg0: i32, %arg1: i32) -> (i32, i32, i32) {
    %c0_i32 = arith.constant 0 : i32
    %c0_i32_0 = arith.constant 0 : i32
    %c0_i32_1 = arith.constant 0 : i32
    return %arg0, %c0_i32, %c0_i32_0 : i32, i32, i32
  }
  func.func @transform_2(%arg0: i32, %arg1: i32) -> (i32, i32, i32) {
    %c0_i32 = arith.constant 0 : i32
    %c0_i32_0 = arith.constant 0 : i32
    %c0_i32_1 = arith.constant 0 : i32
    return %arg0, %c0_i32, %c0_i32_0 : i32, i32, i32
  }
  func.func @transform_3(%arg0: i32, %arg1: i32) -> (i32, i32) {
    %c0_i32 = arith.constant 0 : i32
    %c0_i32_0 = arith.constant 0 : i32
    %c0_i32_1 = arith.constant 0 : i32
    return %c0_i32, %c0_i32_0 : i32, i32
  }
  func.func @transform_4(%arg0: i32, %arg1: i32) -> (i32, i32) {
    %c0_i32 = arith.constant 0 : i32
    %c0_i32_0 = arith.constant 0 : i32
    %c0_i32_1 = arith.constant 0 : i32
    return %c0_i32, %c0_i32_0 : i32, i32
  }
  func.func @transform_5(%arg0: i32, %arg1: i32) -> (i32, i32) {
    %c0_i32 = arith.constant 0 : i32
    %c0_i32_0 = arith.constant 0 : i32
    %c0_i32_1 = arith.constant 0 : i32
    return %c0_i32, %c0_i32_0 : i32, i32
  }
  func.func @transform_6(%arg0: i32, %arg1: i32) -> (i32, i32) {
    %c0_i32 = arith.constant 0 : i32
    %c0_i32_0 = arith.constant 0 : i32
    %c0_i32_1 = arith.constant 0 : i32
    return %c0_i32, %c0_i32_0 : i32, i32
  }
  func.func @transform_7(%arg0: i32, %arg1: i32) -> (i32, i32, i32) {
    %c0_i32 = arith.constant 0 : i32
    %c0_i32_0 = arith.constant 0 : i32
    %c0_i32_1 = arith.constant 0 : i32
    return %arg1, %c0_i32, %c0_i32_0 : i32, i32, i32
  }
  func.func @transform_8(%arg0: i32, %arg1: i32) -> (i32, i32, i32) {
    %c0_i32 = arith.constant 0 : i32
    %c0_i32_0 = arith.constant 0 : i32
    %c0_i32_1 = arith.constant 0 : i32
    return %arg1, %c0_i32, %c0_i32_0 : i32, i32, i32
  }
  func.func @transform_9(%arg0: i32, %arg1: i32) -> (i32, i32, i32, i32) {
    %c0_i32 = arith.constant 0 : i32
    %c0_i32_0 = arith.constant 0 : i32
    %c0_i32_1 = arith.constant 0 : i32
    %c0_i32_2 = arith.constant 0 : i32
    return %arg1, %c0_i32, %c0_i32_0, %c0_i32_1 : i32, i32, i32, i32
  }
  func.func @transform_10(%arg0: i32, %arg1: i32) -> (i32, i32, i32, i32) {
    %c0_i32 = arith.constant 0 : i32
    %c0_i32_0 = arith.constant 0 : i32
    %c0_i32_1 = arith.constant 0 : i32
    %c0_i32_2 = arith.constant 0 : i32
    return %arg1, %c0_i32, %c0_i32_0, %c0_i32_1 : i32, i32, i32, i32
  }
  func.func @transform_11(%arg0: i32, %arg1: i32) -> (i32, i32, i32, i32) {
    %c0_i32 = arith.constant 0 : i32
    %c0_i32_0 = arith.constant 0 : i32
    %c0_i32_1 = arith.constant 0 : i32
    %c0_i32_2 = arith.constant 0 : i32
    return %arg1, %c0_i32, %c0_i32_0, %c0_i32_1 : i32, i32, i32, i32
  }
  func.func @transform_12(%arg0: i32, %arg1: i32) -> (i32, i32, i32, i32) {
    %c0_i32 = arith.constant 0 : i32
    %c0_i32_0 = arith.constant 0 : i32
    %c0_i32_1 = arith.constant 0 : i32
    %c0_i32_2 = arith.constant 0 : i32
    return %arg1, %c0_i32, %c0_i32_0, %c0_i32_1 : i32, i32, i32, i32
  }
  func.func @transform_13(%arg0: i32, %arg1: i32) -> (i32, i32, i32, i32) {
    %c0_i32 = arith.constant 0 : i32
    %c0_i32_0 = arith.constant 0 : i32
    %c0_i32_1 = arith.constant 0 : i32
    %c0_i32_2 = arith.constant 0 : i32
    return %arg1, %c0_i32, %c0_i32_0, %c0_i32_1 : i32, i32, i32, i32
  }
  func.func @transform_14(%arg0: i32, %arg1: i32) -> (i32, i32, i32, i32) {
    %c0_i32 = arith.constant 0 : i32
    %c0_i32_0 = arith.constant 0 : i32
    %c0_i32_1 = arith.constant 0 : i32
    %c0_i32_2 = arith.constant 0 : i32
    return %arg1, %c0_i32, %c0_i32_0, %c0_i32_1 : i32, i32, i32, i32
  }
  func.func @transform_15(%arg0: i32, %arg1: i32) -> (i32, i32, i32, i32) {
    %c0_i32 = arith.constant 0 : i32
    %c0_i32_0 = arith.constant 0 : i32
    %c0_i32_1 = arith.constant 0 : i32
    %c0_i32_2 = arith.constant 0 : i32
    return %arg1, %c0_i32, %c0_i32_0, %c0_i32_1 : i32, i32, i32, i32
  }
  func.func @transform_16(%arg0: i32, %arg1: i32) -> (i32, i32, i32) {
    %c0_i32 = arith.constant 0 : i32
    %c0_i32_0 = arith.constant 0 : i32
    %c0_i32_1 = arith.constant 0 : i32
    return %arg1, %c0_i32, %c0_i32_0 : i32, i32, i32
  }
  func.func @transform_17(%arg0: i32, %arg1: i32) -> (i32, i32, i32) {
    %c0_i32 = arith.constant 0 : i32
    %c0_i32_0 = arith.constant 0 : i32
    %c0_i32_1 = arith.constant 0 : i32
    return %arg1, %c0_i32, %c0_i32_0 : i32, i32, i32
  }
  func.func @transform_18(%arg0: i32, %arg1: i32) -> (i32, i32, i32) {
    %c0_i32 = arith.constant 0 : i32
    %c0_i32_0 = arith.constant 0 : i32
    %c0_i32_1 = arith.constant 0 : i32
    return %arg1, %c0_i32, %c0_i32_0 : i32, i32, i32
  }
  func.func @transform_19(%arg0: i32, %arg1: i32) -> (i32, i32, i32) {
    %c0_i32 = arith.constant 0 : i32
    %c0_i32_0 = arith.constant 0 : i32
    %c0_i32_1 = arith.constant 0 : i32
    return %arg1, %c0_i32, %c0_i32_0 : i32, i32, i32
  }
  func.func @transform_20(%arg0: i32, %arg1: i32) -> (i32, i32, i32) {
    %c0_i32 = arith.constant 0 : i32
    %c0_i32_0 = arith.constant 0 : i32
    %c0_i32_1 = arith.constant 0 : i32
    return %arg1, %c0_i32, %c0_i32_0 : i32, i32, i32
  }
  func.func @transform_21(%arg0: i32, %arg1: i32) -> (i32, i32, i32) {
    %c0_i32 = arith.constant 0 : i32
    %c0_i32_0 = arith.constant 0 : i32
    %c0_i32_1 = arith.constant 0 : i32
    return %arg1, %c0_i32, %c0_i32_0 : i32, i32, i32
  }
  func.func @transform_22(%arg0: i32, %arg1: i32) -> (i32, i32, i32) {
    %c0_i32 = arith.constant 0 : i32
    %c0_i32_0 = arith.constant 0 : i32
    %c0_i32_1 = arith.constant 0 : i32
    return %arg1, %c0_i32, %c0_i32_0 : i32, i32, i32
  }
  func.func @transform_23(%arg0: i32, %arg1: i32) -> (i32, i32, i32) {
    %c0_i32 = arith.constant 0 : i32
    %c0_i32_0 = arith.constant 0 : i32
    %c0_i32_1 = arith.constant 0 : i32
    return %arg0, %c0_i32, %c0_i32_0 : i32, i32, i32
  }
  func.func @transform_24(%arg0: i32, %arg1: i32) -> (i32, i32, i32) {
    %c0_i32 = arith.constant 0 : i32
    %c0_i32_0 = arith.constant 0 : i32
    %c0_i32_1 = arith.constant 0 : i32
    return %arg0, %c0_i32, %c0_i32_0 : i32, i32, i32
  }
}

</mosaic_0001>

<bundles_post_ra>
// kernel: tpu_custom_call.1
= control target key start
LH: loop header
LB: loop body
LE: loop exit
PB: predicated region body
PF: predicated region fallthrough
CT: control target
= control target key end

     0   :  { %s5819_s0 = inlined_call_operand.vmem [shape: f32[2,8,128], index: 0, kind: input, shape index: {}]   ;;  %s5820_s1 = inlined_call_operand.vmem [shape: f32[2,1,8], index: 1, kind: input, shape index: {}]   ;;  %s5821_s2 = inlined_call_operand.vmem [shape: f32[2,1,8], index: 2, kind: input, shape index: {}]   ;;  %s5822_s3 = inlined_call_operand.vmem [shape: f32[1,128], index: 3, kind: input, shape index: {}]   ;;  %s5823_s4 = inlined_call_operand.vmem [shape: f32[1,128], index: 4, kind: input, shape index: {}]   ;;  %s5824_s5 = inlined_call_operand.vmem [shape: f32[1,128], index: 5, kind: input, shape index: {}]   ;;  %s5825_s6 = inlined_call_operand.vmem [shape: f32[1,128], index: 6, kind: input, shape index: {}]   ;;  %s5826_s7 = inlined_call_operand.vmem [shape: f32[2,1,128], index: 7, kind: input, shape index: {}]   ;;  %s5827_s8 = inlined_call_operand.vmem [shape: f32[2,1,128], index: 8, kind: input, shape index: {}]   ;;  %s5828_s9 = inlined_call_operand.vmem [shape: bf16[2,4,128,32], index: 9, kind: input, shape index: {}]   ;;  %s5829_s10 = inlined_call_operand.vmem [shape: f32[2,4,1,32], index: 10, kind: input, shape index: {}]   ;;  %s5830_s11 = inlined_call_operand.vmem [shape: bf16[2,4,128,32], index: 11, kind: input, shape index: {}]   ;;  %s5831_s12 = inlined_call_operand.vmem [shape: f32[2,4,1,32], index: 12, kind: input, shape index: {}]   ;;  %s5832_s13 = inlined_call_operand.vmem [shape: bf16[2,4,128,32], index: 13, kind: input, shape index: {}]   ;;  %s5833_s14 = inlined_call_operand.vmem [shape: f32[2,4,1,32], index: 14, kind: input, shape index: {}]   ;;  %s5834_s15 = inlined_call_operand.vmem [shape: bf16[2,4,32,128], index: 15, kind: input, shape index: {}]   ;;  %s5835_s16 = inlined_call_operand.vmem [shape: f32[2,1,128], index: 16, kind: input, shape index: {}]   ;;  %s5836_s17 = inlined_call_operand.vmem [shape: f32[2,1,128], index: 17, kind: input, shape index: {}]   ;;  %s5837_s18 = inlined_call_operand.vmem [shape: f32[2,1,128], index: 18, kind: input, shape index: {}]   ;;  %s5838_s19 = inlined_call_operand.vmem [shape: bf16[2,128,256], index: 19, kind: input, shape index: {}]   ;;  %s5839_s20 = inlined_call_operand.vmem [shape: f32[2,1,256], index: 20, kind: input, shape index: {}]   ;;  %s5840_s21 = inlined_call_operand.vmem [shape: bf16[2,256,128], index: 21, kind: input, shape index: {}]   ;;  %s5841_s22 = inlined_call_operand.vmem [shape: f32[2,1,128], index: 22, kind: input, shape index: {}]   ;;  %s5842_s23 = inlined_call_operand.hbm [shape: f32[2,8,128], index: 23, kind: output, shape index: {0}]   ;;  %s5843_s24 = inlined_call_operand.hbm [shape: f32[2,1,128], index: 24, kind: output, shape index: {1}]  }
   0x1   :  { %5861 = sst [smem:[#allocation24_spill]] %s5819_s0 }
   0x2   :  { %5862 = sst [smem:[#allocation25_spill]] %s5820_s1 }
   0x3   :  { %5863 = sst [smem:[#allocation26_spill]] %s5821_s2 }
   0x4   :  { %5864 = sst [smem:[#allocation27_spill]] %s5822_s3 }
   0x5   :  { %5865 = sst [smem:[#allocation28_spill]] %s5823_s4 }
   0x6   :  { %5866 = sst [smem:[#allocation29_spill]] %s5824_s5 }
   0x7   :  { %5867 = sst [smem:[#allocation30_spill]] %s5825_s6 }
   0x8   :  { %5868 = sst [smem:[#allocation31_spill]] %s5826_s7 }
   0x9   :  { %5869 = sst [smem:[#allocation32_spill]] %s5827_s8 }
   0xa   :  { %5870 = sst [smem:[#allocation33_spill]] %s5828_s9 }
   0xb   :  { %5871 = sst [smem:[#allocation34_spill]] %s5829_s10 }
   0xc   :  { %5872 = sst [smem:[#allocation35_spill]] %s5830_s11 }
   0xd   :  { %5873 = sst [smem:[#allocation36_spill]] %s5831_s12 }
   0xe   :  { %5874 = sst [smem:[#allocation37_spill]] %s5832_s13 }
   0xf   :  { %5875 = sst [smem:[#allocation38_spill]] %s5833_s14 }
  0x10   :  { %5876 = sst [smem:[#allocation39_spill]] %s5834_s15 }
  0x11   :  { %5877 = sst [smem:[#allocation40_spill]] %s5836_s17 }
  0x12   :  { %5878 = sst [smem:[#allocation41_spill]] %s5837_s18 }
  0x13   :  { %5879 = sst [smem:[#allocation42_spill]] %s5838_s19 }
  0x14   :  { %5880 = sst [smem:[#allocation43_spill]] %s5839_s20 }
  0x15   :  { %5881 = sst [smem:[#allocation44_spill]] %s5840_s21 }
  0x16   :  { %5882 = sst [smem:[#allocation45_spill]] %s5841_s22 }
  0x17   :  { %5883 = sst [smem:[#allocation46_spill]] %s5842_s23 }
  0x18   :  { %5884 = sst [smem:[#allocation47_spill]] %s5843_s24 }
  0x19   :  { %30 = vsyncpa [#allocation5], 0 }
  0x1a   :  { %32 = vsyncpa [#allocation5 + $0x1], 0 }
  0x1b   :  { %33 = vsyncpa [#allocation7], 0 }
  0x1c   :  { %35 = vsyncpa [#allocation7 + $0x1], 0  ;;  %s5157_s5 = smov 0   ;;  %s5159_s26 = smov 0  }
  0x1d   :  { %s5161_s27 = smov 0   ;;  %s5163_s28 = smov 0  }
  0x1e   :  { %s5165_s6 = smov 0   ;;  %s5167_s2 = smov 0  }
  0x1f   :  { %s5169_s29 = smov 0   ;;  %s5171_s0 = smov 0  }
  0x20 LB: > { %5885 = sst [smem:[#allocation10_spill]] %s4995_s5  ;;  %s3953_s7 = sadd.s32 4294967295, %s5023_s0   ;;  %s5023_s0 = sphi %s5171_s0, %s41_s0   ;;  %s5019_s29 = sphi %s5169_s29, %s5954_s29   ;;  %s5015_s2 = sphi %s5167_s2, %s5953_s2   ;;  %s5011_s6 = sphi %s5165_s6, %s5952_s6   ;;  %s5007_s28 = sphi %s5163_s28, %s5951_s28   ;;  %s5003_s27 = sphi %s5161_s27, %s5950_s27   ;;  %s4999_s26 = sphi %s5159_s26, %s5949_s26   ;;  %s4995_s5 = sphi %s5157_s5, %s5948_s5  }
  0x21   : > { %5886 = sst [smem:[#allocation11_spill]] %s4999_s26  ;;  %s3954_s30 = sadd.s32 4294967294, %s5023_s0  }
  0x22   : > { %5887 = sst [smem:[#allocation12_spill]] %s5003_s27  ;;  %s50_s3 = sadd.s32 1, %s5015_s2 }
  0x23   : > { %5888 = sst [smem:[#allocation13_spill]] %s5007_s28  ;;  %p51_p0 = scmp.ge.s32.totalorder %s50_s3, 2 }
  0x24   : > { %5889 = sst [smem:[#allocation14_spill]] %s5011_s6  ;;  %s53_s25 = sadd.s32 1, %s5019_s29 }
  0x25   : > { %5890 = sst [smem:[#allocation15_spill]] %s5015_s2  ;;  %p648_p1 = scmp.ne.s32.totalorder %s5003_s27, %s4999_s26 }
  0x26   : > { %5891 = sst [smem:[#allocation16_spill]] %s5019_s29  ;;  %p649_p2 = scmp.eq.s32.totalorder %s3953_s7, 3 }
  0x27   : > { %5892 = sst [smem:[#allocation17_spill]] %s5023_s0  ;;  %s5956_s3 = smov (%p51_p0, %s50_s3), 0 }
  0x28   : > { %5893 = sst [smem:[#allocation18_spill]] %s5956_s3  ;;  %s5958_s25 = smov (!%p51_p0, %s53_s25), %s5019_s29 }
  0x29   : > { %p5206_p3 = por %p649_p2, %p648_p1  ;;  %p654_p4 = scmp.ne.s32.totalorder %s4999_s26, %s4995_s5 }
  0x2a   : > { %p55_p5 = scmp.ge.s32.totalorder %s5958_s25, 2  ;;  %p655_p6 = scmp.eq.s32.totalorder %s3954_s30, 3 }
  0x2b   : > { %s5894_s8 = scalar_select %p5206_p3, 1, 0 }
  0x2c   : > { %p3957_p7 = scmp.ge.s32.totalorder %s5023_s0, 1  ;;  %p842_p8 = scmp.lt.s32.totalorder %s5023_s0, 5 }
  0x2d   : > { %5895 = sst [smem:[#allocation19_spill]] %s5894_s8  ;;  %s5960_s25 = smov (%p55_p5, %s5958_s25), 0 }
  0x2e   : > { %5896 = sst [smem:[#allocation20_spill]] %s5960_s25  ;;  %p5216_p9 = por %p655_p6, %p654_p4 }
  0x2f   : > { %p843_p10 = pnand %p3957_p7, %p842_p8  ;;  %s635_s1 = ssub.s32 %s5019_s29, %s5960_s25 }
  0x30   : > { %s5897_s4 = scalar_select %p5216_p9, 1, 0 }
  0x31   : > { %s638_s7 = sadd.s32 1, %s5003_s27  ;;  %p636_p11 = scmp.eq.s32.totalorder %s635_s1, 0 }
  0x32   : > { %5898 = sst [smem:[#allocation21_spill]] %s5897_s4  ;;  %846 = sbr.rel (%p843_p10) target bundleno = 3212 (0xc8c), region = 112 }
  0x33   : > { %s5224_s3 = scalar_select %p636_p11, %s5003_s27, %s638_s7  }
  0x35   : > { %5899 = sst [smem:[#allocation22_spill]] %s5224_s3 }
  0x37   : > { %s5227_s30 = sand.u32 1, %s4999_s26   ;;  %p981_p12 = scmp.lt.s32.totalorder %s5011_s6, 1 }
  0x38   : > { %p991_p13 = scmp.lt.s32.totalorder %s5007_s28, 1  ;;  %s5901_s4 = sld [smem:[#allocation24_spill]] }
  0x39   : > { %s5233_s5 = scalar_select %p981_p12, %s5011_s6, 1 }
  0x3a   : > { %s5236_s1 = scalar_select %p991_p13, %s5007_s28, 1 }
  0x3b   : > { %s3959_s7 = sshll.u32 %s5233_s5, 3  ;;  %s5905_s9 = sld [smem:[#allocation33_spill]] }
  0x3c   : > { %s4156_s3 = sshll.u32 %s5236_s1, 8  ;;  %s3962_s25 = sshll.u32 %s5236_s1, 2 }
  0x3d   : > { %s5906_s10 = sld [smem:[#allocation34_spill]]  ;;  %s4159_s22 = sshll.u32 %s5236_s1, 6 }
  0x3e   : > { %s984_s0 = scalar_lea.vmem %s5901_s4, %s3959_s7  ;;  %s5907_s11 = sld [smem:[#allocation35_spill]] }
  0x3f   : > { %s5908_s12 = sld [smem:[#allocation36_spill]]  ;;  %s3973_s29 = sshll.u32 %s5236_s1, 1 }
  0x40   : > { %s5909_s13 = sld [smem:[#allocation37_spill]]  ;;  %s5919_s23 = sshll.u32 %s5227_s30, 3 }
  0x41   : > { %s5263_s4 = scalar_lea.vmem %s5905_s9, %s4156_s3  ;;  %s5910_s14 = sld [smem:[#allocation38_spill]] }
  0x42   : > { %s5912_s15 = sld [smem:[#allocation39_spill]] }
  0x43   : > { %s5268_s8 = scalar_lea.vmem %s5906_s10, %s3962_s25  ;;  %s5916_s27 = sld [smem:[#allocation43_spill]] }
  0x44   : > { %s5273_s18 = scalar_lea.vmem %s5907_s11, %s4156_s3  ;;  %s5917_s9 = sld [smem:[#allocation44_spill]] }
  0x45   : > { %s5278_s28 = scalar_lea.vmem %s5908_s12, %s3962_s25  ;;  %s5918_s12 = sld [smem:[#allocation45_spill]] }
  0x46   : > { %s5283_s2 = scalar_lea.vmem %s5909_s13, %s4156_s3  ;;  %s5331_s3 = scalar_lea.vmem [#allocation4], %s5919_s23 }
  0x47   : > { %s5288_s6 = scalar_lea.vmem %s5910_s14, %s3962_s25  ;;  %s4160_s25 = sshll.u32 %s5236_s1, 7 }
  0x48   : > { %5911 = sst [smem:[#allocation23_spill]] %s5288_s6  ;;  %s5298_s19 = scalar_lea.vmem %s5912_s15, %s4159_s22 }
  0x49   : > { %s5915_s14 = sld [smem:[#allocation42_spill]]  ;;  %s5318_s22 = scalar_lea.vmem %s5916_s27, %s3973_s29 }
  0x4a   : > { %s5323_s10 = scalar_lea.vmem %s5917_s9, %s4160_s25  ;;  %s980_s13 = scalar_lea.vmem [#allocation6], %s5227_s30 }
  0x4b   : > { %s1054_s26 = scalar_lea.vmem %s5918_s12, %s5236_s1 }
  0x4f   : > { %s5312_s6 = scalar_lea.vmem %s5915_s14, %s4160_s25  ;;  %s5920_s14 = sld [smem:[#allocation13_spill]] }
  0x55   : > { %p3976_p0 = scmp.ne.s32.totalorder %s5920_s14, 0 }
  0x56   : > { %s5921_s25 = sld [smem:[#allocation25_spill]] (!%p3976_p0) }
  0x57   : > { %1059 = sbr.rel (%p3976_p0) target bundleno = 400 (0x190), region = 116  ;;  %s5923_s29 = sld [smem:[#allocation27_spill]] (!%p3976_p0) }
  0x58   : > { %s5924_s17 = sld [smem:[#allocation28_spill]] (!%p3976_p0) }
  0x5c   : > { %v1060_v0 = vld [vmem:[%s984_s0] sm:$0xff]  ;;  %s5922_s24 = scalar_lea.vmem %s5921_s25, %s5233_s5  ;;  %vm1093_vm0 = vcmask 57344  }
  0x5d   : > { %1063 = vadd.xlane.f32.xlu0 %v1060_v0  ;;  %v1090_v5 = vld [vmem:[%s5922_s24] sm:$0x1] }
  0x5e   : > { %v3979_v6 = vadd.f32 -1.0, %v1090_v5  ;;  %v3977_v12 = vld [vmem:[%s5923_s29] ss:$0 sm:$0xff] }
  0x5f   : > { %v3978_v14 = vld [vmem:[%s5924_s17] ss:$0 sm:$0xff] }
  0x60   : > { %v1092_v7 = vmul.f32 1e+09, %v3979_v6 }
  0x62   : > { %1094 = vst.msk [vmem:[#allocation3] sm:$0x1] %vm1093_vm0, %v1092_v7 }
  0xe6   : > { %v1064_v1 = vpop.xlane.xlu0 %1063 }
  0xe7   : > { %v1066_v2 = vmul.f32 0.0078125, %v1064_v1 }
  0xe9   : > { %v1067_v3 = vsub.f32 %v1060_v0, %v1066_v2 }
  0xeb   : > { %v1068_v4 = vmul.f32 %v1067_v3, %v1067_v3 }
  0xed   : > { %1069 = vadd.xlane.f32.xlu0 %v1068_v4 }
 0x176   : > { %v1070_v8 = vpop.xlane.xlu0 %1069 }
 0x177   : > { %v1071_v9 = vmul.f32 0.0078125, %v1070_v8 }
 0x179   : > { %v1072_v10 = vadd.f32 1e-05, %v1071_v9 }
 0x17b   : > { %4728 = vrsqrt.f32 %v1072_v10 }
 0x188   : > { %v4729_v11 = vpop.eup %4728 }
 0x189   : > { %v1074_v13 = vmul.f32 %v4729_v11, %v1067_v3 }
 0x18b   : > { %v1081_v15 = vmul.f32 %v3977_v12, %v1074_v13 }
 0x18d   : > { %v1088_v16 = vadd.f32 %v3978_v14, %v1081_v15 }
 0x18f   : > { %1089 = vst [vmem:[#allocation2] sm:$0xff] %v1088_v16 }
 0x190 PF: > { %v4730_v18 = vld [vmem:[%s5263_s4 + $0x38] sm:$0xff]   ;;  %v5025_v20 = vmov 0.0   ;;  %v4732_v21 = vld [vmem:[%s5263_s4 + $0x30] sm:$0xff]   ;;  %v4734_v27 = vld [vmem:[%s5263_s4 + $0x28] sm:$0xff]   ;;  %vm5026_vm1 = vmmov 0   ;;  %s5925_s11 = sld [smem:[#allocation31_spill]] }
 0x191   : > { %v4731_v19 = vld [vmem:[%s5263_s4 + $0x78] sm:$0xff]   ;;  %4322 = vmatprep.subr.bf16.mxu0 %v5025_v20  ;;  %4342 = vmatprep.subr.bf16.mxu1 %v5025_v20  ;;  %v4733_v22 = vld [vmem:[%s5263_s4 + $0x70] sm:$0xff]   ;;  %v4735_v28 = vld [vmem:[%s5263_s4 + $0x68] sm:$0xff]   ;;  %s5927_s20 = sld [smem:[#allocation32_spill]]  ;;  %vm2476_vm2 = vcmask 261120   ;;  %vm2717_vm3 = vcmask 1043456  }
 0x192   : > { %4323 = vmatpush3.bf16.msra.mxu0 %v4730_v18  ;;  %4343 = vmatpush3.bf16.msra.mxu1 %v4731_v19  ;;  %v4736_v29 = vld [vmem:[%s5263_s4 + $0x20] sm:$0xff]   ;;  %v4738_v31 = vld [vmem:[%s5263_s4 + $0x18] sm:$0xff]   ;;  %v4740_v33 = vld [vmem:[%s5263_s4 + $0x10] sm:$0xff]   ;;  %vm2661_vm4 = vcmask 64512   ;;  %s5931_s24 = sld [smem:[#allocation40_spill]] }
 0x193   : > { %4324 = vmatprep.subr.bf16.mxu0 %v5025_v20  ;;  %4344 = vmatprep.subr.bf16.mxu1 %v5025_v20  ;;  %v4737_v30 = vld [vmem:[%s5263_s4 + $0x60] sm:$0xff]   ;;  %v4739_v32 = vld [vmem:[%s5263_s4 + $0x58] sm:$0xff]   ;;  %v4741_v34 = vld [vmem:[%s5263_s4 + $0x50] sm:$0xff]   ;;  %s5933_s29 = sld [smem:[#allocation41_spill]] }
 0x194   : > { %v4742_v35 = vld [vmem:[%s5263_s4 + $0x8] sm:$0xff]   ;;  %v4744_v37 = vld [vmem:[%s5263_s4] sm:$0xff]   ;;  %4338 = vmatprep.mubr.msk.bf16.mxu0 %vm5026_vm1, %v5025_v20  ;;  %4358 = vmatprep.mubr.msk.bf16.mxu1 %vm5026_vm1, %v5025_v20  ;;  %v4746_v48 = vld [vmem:[%s5263_s4 + $0xb8] sm:$0xff]   ;;  %s5936_s17 = sld [smem:[#allocation13_spill]] }
 0x195   : > { %v4743_v36 = vld [vmem:[%s5263_s4 + $0x48] sm:$0xff]   ;;  %v4745_v38 = vld [vmem:[%s5263_s4 + $0x40] sm:$0xff]   ;;  %v4747_v49 = vld [vmem:[%s5263_s4 + $0xf8] sm:$0xff]  }
 0x196   : > { %v1095_v17 = vld [vmem:[#allocation2] sm:$0xff]  ;;  %4325 = vmatpush3.bf16.msra.mxu0 %v4732_v21  ;;  %4345 = vmatpush3.bf16.msra.mxu1 %v4733_v22  ;;  %s5926_s12 = scalar_lea.vmem %s5925_s11, %s5236_s1  ;;  %v4748_v51 = vld [vmem:[%s5263_s4 + $0xb0] sm:$0xff]   ;;  %v4750_v53 = vld [vmem:[%s5263_s4 + $0xa8] sm:$0xff]  }
 0x197   : > { %1098 = vadd.xlane.f32.xlu0 %v1095_v17  ;;  %4326 = vmatprep.subr.bf16.mxu0 %v5025_v20  ;;  %v3980_v43 = vld [vmem:[%s5926_s12] ss:$0 sm:$0xff]  ;;  %s5928_s25 = scalar_lea.vmem %s5927_s20, %s5236_s1  ;;  %v4749_v52 = vld [vmem:[%s5263_s4 + $0xf0] sm:$0xff]   ;;  %v4751_v54 = vld [vmem:[%s5263_s4 + $0xe8] sm:$0xff]  }
 0x198   : > { %4346 = vmatprep.subr.bf16.mxu1 %v5025_v20  ;;  %v3981_v45 = vld [vmem:[%s5928_s25] ss:$0 sm:$0xff]  ;;  %v4754_v57 = vld [vmem:[%s5263_s4 + $0x98] sm:$0xff]   ;;  %v4756_v59 = vld [vmem:[%s5263_s4 + $0x90] sm:$0xff]   ;;  %s5932_s0 = scalar_lea.vmem %s5931_s24, %s5236_s1 }
 0x199   : > { %v4752_v55 = vld [vmem:[%s5263_s4 + $0xa0] sm:$0xff]   ;;  %v4755_v58 = vld [vmem:[%s5263_s4 + $0xd8] sm:$0xff]   ;;  %v4757_v60 = vld [vmem:[%s5263_s4 + $0xd0] sm:$0xff]   ;;  %s5934_s21 = scalar_lea.vmem %s5933_s29, %s5236_s1 }
 0x19a   : > { %4327 = vmatpush3.bf16.msra.mxu0 %v4734_v27  ;;  %4347 = vmatpush3.bf16.msra.mxu1 %v4735_v28  ;;  %v4753_v56 = vld [vmem:[%s5263_s4 + $0xe0] sm:$0xff]   ;;  %v4758_v61 = vld [vmem:[%s5263_s4 + $0x88] sm:$0xff]   ;;  %v4762_v1 = vld [vmem:[%s5273_s18 + $0x38] sm:$0xff]   ;;  %p4147_p1 = scmp.ne.s32.totalorder %s5936_s17, 1 }
 0x19b   : > { %4328 = vmatprep.subr.bf16.mxu0 %v5025_v20  ;;  %4348 = vmatprep.subr.bf16.mxu1 %v5025_v20  ;;  %v4759_v62 = vld [vmem:[%s5263_s4 + $0xc8] sm:$0xff]   ;;  %v4760_v63 = vld [vmem:[%s5263_s4 + $0x80] sm:$0xff]   ;;  %v4763_v2 = vld [vmem:[%s5273_s18 + $0x78] sm:$0xff]   ;;  %s5937_s9 = sld [smem:[#allocation29_spill]] (!%p4147_p1) }
 0x19c   : > { %v4761_v0 = vld [vmem:[%s5263_s4 + $0xc0] sm:$0xff]   ;;  %v4764_v3 = vld [vmem:[%s5273_s18 + $0x30] sm:$0xff]   ;;  %v4766_v5 = vld [vmem:[%s5273_s18 + $0x28] sm:$0xff]   ;;  %s5929_s4 = sld [smem:[#allocation23_spill]] }
 0x19d   : > { %v4765_v4 = vld [vmem:[%s5273_s18 + $0x70] sm:$0xff]   ;;  %v4767_v6 = vld [vmem:[%s5273_s18 + $0x68] sm:$0xff]   ;;  %v4768_v7 = vld [vmem:[%s5273_s18 + $0x20] sm:$0xff]   ;;  %s5938_s12 = sld [smem:[#allocation30_spill]] (!%p4147_p1) }
 0x19e   : > { %4329 = vmatpush3.bf16.msra.mxu0 %v4736_v29  ;;  %4349 = vmatpush3.bf16.msra.mxu1 %v4737_v30  ;;  %v4769_v8 = vld [vmem:[%s5273_s18 + $0x60] sm:$0xff]   ;;  %v4770_v9 = vld [vmem:[%s5273_s18 + $0x18] sm:$0xff]   ;;  %v4772_v11 = vld [vmem:[%s5273_s18 + $0x10] sm:$0xff]   ;;  %s5939_s20 = sld [smem:[#allocation26_spill]] (!%p4147_p1) }
 0x19f   : > { %4330 = vmatprep.subr.bf16.mxu0 %v5025_v20  ;;  %4350 = vmatprep.subr.bf16.mxu1 %v5025_v20  ;;  %v4771_v10 = vld [vmem:[%s5273_s18 + $0x58] sm:$0xff]   ;;  %v4773_v12 = vld [vmem:[%s5273_s18 + $0x50] sm:$0xff]   ;;  %v4774_v13 = vld [vmem:[%s5273_s18 + $0x8] sm:$0xff]  }
 0x1a0   : > { %v4775_v14 = vld [vmem:[%s5273_s18 + $0x48] sm:$0xff]   ;;  %v4776_v15 = vld [vmem:[%s5273_s18] sm:$0xff]   ;;  %v4779_v18 = vld [vmem:[%s5273_s18 + $0xf8] sm:$0xff]  }
 0x1a1   : > { %v4777_v16 = vld [vmem:[%s5273_s18 + $0x40] sm:$0xff]   ;;  %v4780_v19 = vld [vmem:[%s5273_s18 + $0xb0] sm:$0xff]   ;;  %v4782_v22 = vld [vmem:[%s5273_s18 + $0xa8] sm:$0xff]  }
 0x1a2   : > { %4331 = vmatpush3.bf16.msra.mxu0 %v4738_v31  ;;  %4351 = vmatpush3.bf16.msra.mxu1 %v4739_v32  ;;  %v4781_v21 = vld [vmem:[%s5273_s18 + $0xf0] sm:$0xff]   ;;  %v4787_v27 = vld [vmem:[%s5273_s18 + $0xd8] sm:$0xff]   ;;  %v4790_v30 = vld [vmem:[%s5273_s18 + $0x88] sm:$0xff]  }
 0x1a3   : > { %4332 = vmatprep.subr.bf16.mxu0 %v5025_v20  ;;  %4352 = vmatprep.subr.bf16.mxu1 %v5025_v20  ;;  %v4788_v28 = vld [vmem:[%s5273_s18 + $0x90] sm:$0xff]   ;;  %v4791_v31 = vld [vmem:[%s5273_s18 + $0xc8] sm:$0xff]   ;;  %v4792_v32 = vld [vmem:[%s5273_s18 + $0x80] sm:$0xff]  }
 0x1a4   : > { %v4789_v29 = vld [vmem:[%s5273_s18 + $0xd0] sm:$0xff]   ;;  %s5940_s25 = scalar_lea.vmem (!%p4147_p1), %s5939_s20, %s5233_s5 }
 0x1a6   : > { %4333 = vmatpush3.bf16.msra.mxu0 %v4740_v33  ;;  %4353 = vmatpush3.bf16.msra.mxu1 %v4741_v34  ;;  %v4793_v33 = vld [vmem:[%s5273_s18 + $0xc0] sm:$0xff]   ;;  %v4794_v34 = vld [vmem:[%s5283_s2 + $0x38] sm:$0xff]  }
 0x1a7   : > { %4334 = vmatprep.subr.bf16.mxu0 %v5025_v20  ;;  %4354 = vmatprep.subr.bf16.mxu1 %v5025_v20 }
 0x1aa   : > { %4335 = vmatpush3.bf16.msra.mxu0 %v4742_v35  ;;  %4355 = vmatpush3.bf16.msra.mxu1 %v4743_v36  ;;  %v4795_v35 = vld [vmem:[%s5283_s2 + $0x78] sm:$0xff]   ;;  %v4796_v36 = vld [vmem:[%s5283_s2 + $0x30] sm:$0xff]  }
 0x1ab   : > { %4336 = vmatprep.subr.bf16.mxu0 %v5025_v20  ;;  %4356 = vmatprep.subr.bf16.mxu1 %v5025_v20 }
 0x1ae   : > { %4337 = vmatpush3.bf16.msra.mxu0 %v4744_v37  ;;  %4357 = vmatpush3.bf16.msra.mxu1 %v4745_v38  ;;  %v4797_v37 = vld [vmem:[%s5283_s2 + $0x70] sm:$0xff]   ;;  %v4798_v38 = vld [vmem:[%s5283_s2 + $0x28] sm:$0xff]  }
 0x1af   : > { %4362 = vmatprep.subr.bf16.mxu0 %v5025_v20  ;;  %4382 = vmatprep.subr.bf16.mxu1 %v5025_v20 }
 0x220   : > { %v1099_v23 = vpop.xlane.xlu0 %1098 }
 0x221   : > { %v1101_v24 = vmul.f32 0.0078125, %v1099_v23  ;;  %v4783_v23 = vld [vmem:[%s5273_s18 + $0xe8] sm:$0xff]  }
 0x223   : > { %v1102_v25 = vsub.f32 %v1095_v17, %v1101_v24  ;;  %v4778_v17 = vld [vmem:[%s5273_s18 + $0xb8] sm:$0xff]   ;;  %v4784_v24 = vld [vmem:[%s5273_s18 + $0xa0] sm:$0xff]  }
 0x225   : > { %v1103_v26 = vmul.f32 %v1102_v25, %v1102_v25 }
 0x227   : > { %1104 = vadd.xlane.f32.xlu0 %v1103_v26  ;;  %v4786_v26 = vld [vmem:[%s5273_s18 + $0x98] sm:$0xff]  }
 0x2b0   : > { %v1105_v39 = vpop.xlane.xlu0 %1104 }
 0x2b1   : > { %v1106_v40 = vmul.f32 0.0078125, %v1105_v39  ;;  %v4799_v39 = vld [vmem:[%s5283_s2 + $0x68] sm:$0xff]  }
 0x2b3   : > { %v1107_v41 = vadd.f32 1e-05, %v1106_v40  ;;  %v4800_v40 = vld [vmem:[%s5283_s2 + $0x20] sm:$0xff]  }
 0x2b5   : > { %4874 = vrsqrt.f32 %v1107_v41  ;;  %v4801_v41 = vld [vmem:[%s5283_s2 + $0x60] sm:$0xff]  }
 0x2c2   : > { %v4875_v42 = vpop.eup %4874 }
 0x2c3   : > { %v1109_v44 = vmul.f32 %v4875_v42, %v1102_v25  ;;  %v4785_v25 = vld [vmem:[%s5273_s18 + $0xe0] sm:$0xff]   ;;  %v4802_v42 = vld [vmem:[%s5283_s2 + $0x18] sm:$0xff]  }
 0x2c5   : > { %v1116_v46 = vmul.f32 %v3980_v43, %v1109_v44  ;;  %v4803_v43 = vld [vmem:[%s5283_s2 + $0x58] sm:$0xff]   ;;  %v4804_v44 = vld [vmem:[%s5283_s2 + $0x10] sm:$0xff]  }
 0x2c7   : > { %v1123_v47 = vadd.f32 %v3981_v45, %v1116_v46  ;;  %v4805_v45 = vld [vmem:[%s5283_s2 + $0x50] sm:$0xff]   ;;  %v4806_v46 = vld [vmem:[%s5283_s2 + $0x8] sm:$0xff]  }
 0x2c9   : > { %v5396_v50 = vpack.c.bf16 %v1123_v47, %v1123_v47  ;;  %v4807_v47 = vld [vmem:[%s5283_s2 + $0x48] sm:$0xff]  }
 0x2cb   : > { %4339 = vmatmul.mubr.bf16.vlgmr.msra.gmra.mxu0 %v5396_v50  ;;  %4359 = vmatmul.mubr.bf16.vlgmr.msra.gmra.mxu1 %v5396_v50 }
 0x2cc   : > { %4363 = vmatpush3.bf16.msra.mxu0 %v4746_v48  ;;  %4383 = vmatpush3.bf16.msra.mxu1 %v4747_v49  ;;  %v4808_v48 = vld [vmem:[%s5283_s2] sm:$0xff]  }
 0x2cd   : > { %4364 = vmatprep.subr.bf16.mxu0 %v5025_v20  ;;  %4384 = vmatprep.subr.bf16.mxu1 %v5025_v20  ;;  %v4809_v49 = vld [vmem:[%s5283_s2 + $0x40] sm:$0xff]  }
 0x2ce   : > { %4378 = vmatprep.mubr.msk.bf16.mxu0 %vm5026_vm1, %v5025_v20  ;;  %4398 = vmatprep.mubr.msk.bf16.mxu1 %vm5026_vm1, %v5025_v20 }
 0x2d0   : > { %4365 = vmatpush3.bf16.msra.mxu0 %v4748_v51  ;;  %4385 = vmatpush3.bf16.msra.mxu1 %v4749_v52  ;;  %v4810_v51 = vld [vmem:[%s5283_s2 + $0xb8] sm:$0xff]  }
 0x2d1   : > { %4366 = vmatprep.subr.bf16.mxu0 %v5025_v20  ;;  %4386 = vmatprep.subr.bf16.mxu1 %v5025_v20  ;;  %v4811_v52 = vld [vmem:[%s5283_s2 + $0xf8] sm:$0xff]  }
 0x2d4   : > { %4367 = vmatpush3.bf16.msra.mxu0 %v4750_v53  ;;  %4387 = vmatpush3.bf16.msra.mxu1 %v4751_v54  ;;  %v4812_v53 = vld [vmem:[%s5283_s2 + $0xb0] sm:$0xff]  }
 0x2d5   : > { %4368 = vmatprep.subr.bf16.mxu0 %v5025_v20  ;;  %4388 = vmatprep.subr.bf16.mxu1 %v5025_v20  ;;  %v4813_v54 = vld [vmem:[%s5283_s2 + $0xf0] sm:$0xff]  }
 0x2d8   : > { %4369 = vmatpush3.bf16.msra.mxu0 %v4752_v55  ;;  %4389 = vmatpush3.bf16.msra.mxu1 %v4753_v56  ;;  %v4814_v55 = vld [vmem:[%s5283_s2 + $0xa8] sm:$0xff]  }
 0x2d9   : > { %4370 = vmatprep.subr.bf16.mxu0 %v5025_v20  ;;  %4390 = vmatprep.subr.bf16.mxu1 %v5025_v20  ;;  %v4815_v56 = vld [vmem:[%s5283_s2 + $0xe8] sm:$0xff]  }
 0x2dc   : > { %4371 = vmatpush3.bf16.msra.mxu0 %v4754_v57  ;;  %4391 = vmatpush3.bf16.msra.mxu1 %v4755_v58  ;;  %v4816_v57 = vld [vmem:[%s5283_s2 + $0xa0] sm:$0xff]  }
 0x2dd   : > { %4372 = vmatprep.subr.bf16.mxu0 %v5025_v20  ;;  %4392 = vmatprep.subr.bf16.mxu1 %v5025_v20  ;;  %v4817_v58 = vld [vmem:[%s5283_s2 + $0xe0] sm:$0xff]  }
 0x2e0   : > { %4373 = vmatpush3.bf16.msra.mxu0 %v4756_v59  ;;  %4393 = vmatpush3.bf16.msra.mxu1 %v4757_v60  ;;  %v4818_v59 = vld [vmem:[%s5283_s2 + $0x98] sm:$0xff]  }
 0x2e1   : > { %4374 = vmatprep.subr.bf16.mxu0 %v5025_v20  ;;  %4394 = vmatprep.subr.bf16.mxu1 %v5025_v20  ;;  %v4819_v60 = vld [vmem:[%s5283_s2 + $0xd8] sm:$0xff]  }
 0x2e4   : > { %4375 = vmatpush3.bf16.msra.mxu0 %v4758_v61  ;;  %4395 = vmatpush3.bf16.msra.mxu1 %v4759_v62  ;;  %v4820_v61 = vld [vmem:[%s5283_s2 + $0x90] sm:$0xff]  }
 0x2e5   : > { %4376 = vmatprep.subr.bf16.mxu0 %v5025_v20  ;;  %4396 = vmatprep.subr.bf16.mxu1 %v5025_v20  ;;  %v4821_v62 = vld [vmem:[%s5283_s2 + $0xd0] sm:$0xff]  }
 0x2e8   : > { %4377 = vmatpush3.bf16.msra.mxu0 %v4760_v63  ;;  %4397 = vmatpush3.bf16.msra.mxu1 %v4761_v0  ;;  %v4822_v63 = vld [vmem:[%s5283_s2 + $0x88] sm:$0xff]  }
 0x2e9   : > { %4402 = vmatprep.subr.bf16.mxu0 %v5025_v20  ;;  %4422 = vmatprep.subr.bf16.mxu1 %v5025_v20  ;;  %v4823_v0 = vld [vmem:[%s5283_s2 + $0xc8] sm:$0xff]  }
 0x2eb   : > { %4379 = vmatmul.mubr.bf16.vlgmr.msra.gmra.mxu0 %v5396_v50  ;;  %4399 = vmatmul.mubr.bf16.vlgmr.msra.gmra.mxu1 %v5396_v50 }
 0x2ec   : > { %4403 = vmatpush3.bf16.msra.mxu0 %v4762_v1  ;;  %4423 = vmatpush3.bf16.msra.mxu1 %v4763_v2  ;;  %v4824_v1 = vld [vmem:[%s5283_s2 + $0x80] sm:$0xff]  }
 0x2ed   : > { %4404 = vmatprep.subr.bf16.mxu0 %v5025_v20  ;;  %4424 = vmatprep.subr.bf16.mxu1 %v5025_v20  ;;  %v4825_v2 = vld [vmem:[%s5283_s2 + $0xc0] sm:$0xff]  }
 0x2ee   : > { %4418 = vmatprep.mubr.msk.bf16.mxu0 %vm5026_vm1, %v5025_v20  ;;  %4438 = vmatprep.mubr.msk.bf16.mxu1 %vm5026_vm1, %v5025_v20 }
 0x2f0   : > { %4405 = vmatpush3.bf16.msra.mxu0 %v4764_v3  ;;  %4425 = vmatpush3.bf16.msra.mxu1 %v4765_v4 }
 0x2f1   : > { %4406 = vmatprep.subr.bf16.mxu0 %v5025_v20  ;;  %4426 = vmatprep.subr.bf16.mxu1 %v5025_v20 }
 0x2f4   : > { %4407 = vmatpush3.bf16.msra.mxu0 %v4766_v5  ;;  %4427 = vmatpush3.bf16.msra.mxu1 %v4767_v6 }
 0x2f5   : > { %4408 = vmatprep.subr.bf16.mxu0 %v5025_v20  ;;  %4428 = vmatprep.subr.bf16.mxu1 %v5025_v20 }
 0x2f8   : > { %4409 = vmatpush3.bf16.msra.mxu0 %v4768_v7  ;;  %4429 = vmatpush3.bf16.msra.mxu1 %v4769_v8 }
 0x2f9   : > { %4410 = vmatprep.subr.bf16.mxu0 %v5025_v20  ;;  %4430 = vmatprep.subr.bf16.mxu1 %v5025_v20 }
 0x2fc   : > { %4411 = vmatpush3.bf16.msra.mxu0 %v4770_v9  ;;  %4431 = vmatpush3.bf16.msra.mxu1 %v4771_v10 }
 0x2fd   : > { %4412 = vmatprep.subr.bf16.mxu0 %v5025_v20  ;;  %4432 = vmatprep.subr.bf16.mxu1 %v5025_v20 }
 0x300   : > { %4413 = vmatpush3.bf16.msra.mxu0 %v4772_v11  ;;  %4433 = vmatpush3.bf16.msra.mxu1 %v4773_v12 }
 0x301   : > { %4414 = vmatprep.subr.bf16.mxu0 %v5025_v20  ;;  %4434 = vmatprep.subr.bf16.mxu1 %v5025_v20 }
 0x304   : > { %4415 = vmatpush3.bf16.msra.mxu0 %v4774_v13  ;;  %4435 = vmatpush3.bf16.msra.mxu1 %v4775_v14 }
 0x305   : > { %4416 = vmatprep.subr.bf16.mxu0 %v5025_v20  ;;  %4436 = vmatprep.subr.bf16.mxu1 %v5025_v20 }
 0x308   : > { %4417 = vmatpush3.bf16.msra.mxu0 %v4776_v15  ;;  %4437 = vmatpush3.bf16.msra.mxu1 %v4777_v16 }
 0x309   : > { %4442 = vmatprep.subr.bf16.mxu0 %v5025_v20  ;;  %4462 = vmatprep.subr.bf16.mxu1 %v5025_v20 }
 0x30b   : > { %4419 = vmatmul.mubr.bf16.vlgmr.msra.gmra.mxu0 %v5396_v50  ;;  %4439 = vmatmul.mubr.bf16.vlgmr.msra.gmra.mxu1 %v5396_v50 }
 0x30c   : > { %4443 = vmatpush3.bf16.msra.mxu0 %v4778_v17  ;;  %4463 = vmatpush3.bf16.msra.mxu1 %v4779_v18  ;;  %v4018_v18 = vld [vmem:[%s5278_s28] ss:$0 sm:$0xff] }
 0x30d   : > { %4444 = vmatprep.subr.bf16.mxu0 %v5025_v20  ;;  %4464 = vmatprep.subr.bf16.mxu1 %v5025_v20 }
 0x30e   : > { %4458 = vmatprep.mubr.msk.bf16.mxu0 %vm5026_vm1, %v5025_v20  ;;  %4478 = vmatprep.mubr.msk.bf16.mxu1 %vm5026_vm1, %v5025_v20 }
 0x310   : > { %4445 = vmatpush3.bf16.msra.mxu0 %v4780_v19  ;;  %4465 = vmatpush3.bf16.msra.mxu1 %v4781_v21  ;;  %v4019_v19 = vld [vmem:[%s5278_s28 + $0x1] ss:$0 sm:$0xff]  ;;  %v3982_v21 = vld [vmem:[%s5268_s8] ss:$0 sm:$0xff] }
 0x311   : > { %4446 = vmatprep.subr.bf16.mxu0 %v5025_v20  ;;  %4466 = vmatprep.subr.bf16.mxu1 %v5025_v20 }
 0x314   : > { %4447 = vmatpush3.bf16.msra.mxu0 %v4782_v22  ;;  %4467 = vmatpush3.bf16.msra.mxu1 %v4783_v23  ;;  %v3983_v22 = vld [vmem:[%s5268_s8 + $0x1] ss:$0 sm:$0xff] }
 0x315   : > { %4448 = vmatprep.subr.bf16.mxu0 %v5025_v20  ;;  %4468 = vmatprep.subr.bf16.mxu1 %v5025_v20 }
 0x318   : > { %4449 = vmatpush3.bf16.msra.mxu0 %v4784_v24  ;;  %4469 = vmatpush3.bf16.msra.mxu1 %v4785_v25 }
 0x319   : > { %4450 = vmatprep.subr.bf16.mxu0 %v5025_v20  ;;  %4470 = vmatprep.subr.bf16.mxu1 %v5025_v20 }
 0x31c   : > { %4451 = vmatpush3.bf16.msra.mxu0 %v4786_v26  ;;  %4471 = vmatpush3.bf16.msra.mxu1 %v4787_v27 }
 0x31d   : > { %4452 = vmatprep.subr.bf16.mxu0 %v5025_v20  ;;  %4472 = vmatprep.subr.bf16.mxu1 %v5025_v20 }
 0x320   : > { %4453 = vmatpush3.bf16.msra.mxu0 %v4788_v28  ;;  %4473 = vmatpush3.bf16.msra.mxu1 %v4789_v29 }
 0x321   : > { %4454 = vmatprep.subr.bf16.mxu0 %v5025_v20  ;;  %4474 = vmatprep.subr.bf16.mxu1 %v5025_v20 }
 0x324   : > { %4455 = vmatpush3.bf16.msra.mxu0 %v4790_v30  ;;  %4475 = vmatpush3.bf16.msra.mxu1 %v4791_v31 }
 0x325   : > { %4456 = vmatprep.subr.bf16.mxu0 %v5025_v20  ;;  %4476 = vmatprep.subr.bf16.mxu1 %v5025_v20 }
 0x328   : > { %4457 = vmatpush3.bf16.msra.mxu0 %v4792_v32  ;;  %4477 = vmatpush3.bf16.msra.mxu1 %v4793_v33 }
 0x329   : > { %4482 = vmatprep.subr.bf16.mxu0 %v5025_v20  ;;  %4502 = vmatprep.subr.bf16.mxu1 %v5025_v20 }
 0x32b   : > { %4459 = vmatmul.mubr.bf16.vlgmr.msra.gmra.mxu0 %v5396_v50  ;;  %4479 = vmatmul.mubr.bf16.vlgmr.msra.gmra.mxu1 %v5396_v50 }
 0x32c   : > { %4483 = vmatpush3.bf16.msra.mxu0 %v4794_v34  ;;  %4503 = vmatpush3.bf16.msra.mxu1 %v4795_v35 }
 0x32d   : > { %4484 = vmatprep.subr.bf16.mxu0 %v5025_v20  ;;  %4504 = vmatprep.subr.bf16.mxu1 %v5025_v20 }
 0x32e   : > { %4498 = vmatprep.mubr.msk.bf16.mxu0 %vm5026_vm1, %v5025_v20  ;;  %4518 = vmatprep.mubr.msk.bf16.mxu1 %vm5026_vm1, %v5025_v20 }
 0x330   : > { %4485 = vmatpush3.bf16.msra.mxu0 %v4796_v36  ;;  %4505 = vmatpush3.bf16.msra.mxu1 %v4797_v37 }
 0x331   : > { %4486 = vmatprep.subr.bf16.mxu0 %v5025_v20  ;;  %4506 = vmatprep.subr.bf16.mxu1 %v5025_v20 }
 0x334   : > { %4487 = vmatpush3.bf16.msra.mxu0 %v4798_v38  ;;  %4507 = vmatpush3.bf16.msra.mxu1 %v4799_v39 }
 0x335   : > { %4488 = vmatprep.subr.bf16.mxu0 %v5025_v20  ;;  %4508 = vmatprep.subr.bf16.mxu1 %v5025_v20 }
 0x338   : > { %4489 = vmatpush3.bf16.msra.mxu0 %v4800_v40  ;;  %4509 = vmatpush3.bf16.msra.mxu1 %v4801_v41 }
 0x339   : > { %4490 = vmatprep.subr.bf16.mxu0 %v5025_v20  ;;  %4510 = vmatprep.subr.bf16.mxu1 %v5025_v20 }
 0x33c   : > { %4491 = vmatpush3.bf16.msra.mxu0 %v4802_v42  ;;  %4511 = vmatpush3.bf16.msra.mxu1 %v4803_v43  ;;  %v4020_v43 = vld [vmem:[%s5278_s28 + $0x2] ss:$0 sm:$0xff] }
 0x33d   : > { %4492 = vmatprep.subr.bf16.mxu0 %v5025_v20  ;;  %4512 = vmatprep.subr.bf16.mxu1 %v5025_v20 }
 0x340   : > { %4493 = vmatpush3.bf16.msra.mxu0 %v4804_v44  ;;  %4513 = vmatpush3.bf16.msra.mxu1 %v4805_v45  ;;  %v4021_v44 = vld [vmem:[%s5278_s28 + $0x3] ss:$0 sm:$0xff]  ;;  %v3984_v45 = vld [vmem:[%s5268_s8 + $0x2] ss:$0 sm:$0xff]  ;;  %s5930_s28 = scalar_lea.vmem %s5835_s16, %s5236_s1 }
 0x341   : > { %4494 = vmatprep.subr.bf16.mxu0 %v5025_v20  ;;  %4514 = vmatprep.subr.bf16.mxu1 %v5025_v20 }
 0x344   : > { %4495 = vmatpush3.bf16.msra.mxu0 %v4806_v46  ;;  %4515 = vmatpush3.bf16.msra.mxu1 %v4807_v47  ;;  %v3985_v46 = vld [vmem:[%s5268_s8 + $0x3] ss:$0 sm:$0xff] }
 0x345   : > { %4496 = vmatprep.subr.bf16.mxu0 %v5025_v20  ;;  %4516 = vmatprep.subr.bf16.mxu1 %v5025_v20 }
 0x348   : > { %4497 = vmatpush3.bf16.msra.mxu0 %v4808_v48  ;;  %4517 = vmatpush3.bf16.msra.mxu1 %v4809_v49 }
 0x349   : > { %4522 = vmatprep.subr.bf16.mxu0 %v5025_v20  ;;  %4542 = vmatprep.subr.bf16.mxu1 %v5025_v20 }
 0x34b   : > { %4499 = vmatmul.mubr.bf16.vlgmr.msra.gmra.mxu0 %v5396_v50  ;;  %4519 = vmatmul.mubr.bf16.vlgmr.msra.gmra.mxu1 %v5396_v50 }
 0x34c   : > { %4523 = vmatpush3.bf16.msra.mxu0 %v4810_v51  ;;  %4543 = vmatpush3.bf16.msra.mxu1 %v4811_v52 }
 0x34d   : > { %4524 = vmatprep.subr.bf16.mxu0 %v5025_v20  ;;  %4544 = vmatprep.subr.bf16.mxu1 %v5025_v20 }
 0x34e   : > { %4538 = vmatprep.mubr.msk.bf16.mxu0 %vm5026_vm1, %v5025_v20  ;;  %4558 = vmatprep.mubr.msk.bf16.mxu1 %vm5026_vm1, %v5025_v20 }
 0x350   : > { %4525 = vmatpush3.bf16.msra.mxu0 %v4812_v53  ;;  %4545 = vmatpush3.bf16.msra.mxu1 %v4813_v54 }
 0x351   : > { %4526 = vmatprep.subr.bf16.mxu0 %v5025_v20  ;;  %4546 = vmatprep.subr.bf16.mxu1 %v5025_v20 }
 0x354   : > { %4527 = vmatpush3.bf16.msra.mxu0 %v4814_v55  ;;  %4547 = vmatpush3.bf16.msra.mxu1 %v4815_v56 }
 0x355   : > { %4528 = vmatprep.subr.bf16.mxu0 %v5025_v20  ;;  %4548 = vmatprep.subr.bf16.mxu1 %v5025_v20 }
 0x358   : > { %4529 = vmatpush3.bf16.msra.mxu0 %v4816_v57  ;;  %4549 = vmatpush3.bf16.msra.mxu1 %v4817_v58 }
 0x359   : > { %4530 = vmatprep.subr.bf16.mxu0 %v5025_v20  ;;  %4550 = vmatprep.subr.bf16.mxu1 %v5025_v20 }
 0x35c   : > { %4531 = vmatpush3.bf16.msra.mxu0 %v4818_v59  ;;  %4551 = vmatpush3.bf16.msra.mxu1 %v4819_v60 }
 0x35d   : > { %4532 = vmatprep.subr.bf16.mxu0 %v5025_v20  ;;  %4552 = vmatprep.subr.bf16.mxu1 %v5025_v20 }
 0x360   : > { %4533 = vmatpush3.bf16.msra.mxu0 %v4820_v61  ;;  %4553 = vmatpush3.bf16.msra.mxu1 %v4821_v62 }
 0x361   : > { %4534 = vmatprep.subr.bf16.mxu0 %v5025_v20  ;;  %4554 = vmatprep.subr.bf16.mxu1 %v5025_v20 }
 0x364   : > { %4535 = vmatpush3.bf16.msra.mxu0 %v4822_v63  ;;  %4555 = vmatpush3.bf16.msra.mxu1 %v4823_v0 }
 0x365   : > { %4536 = vmatprep.subr.bf16.mxu0 %v5025_v20  ;;  %4556 = vmatprep.subr.bf16.mxu1 %v5025_v20 }
 0x368   : > { %4537 = vmatpush3.bf16.msra.mxu0 %v4824_v1  ;;  %4557 = vmatpush3.bf16.msra.mxu1 %v4825_v2 }
 0x369   : > { %4562 = vmatprep.subr.bf16.mxu0 %v5025_v20  ;;  %4568 = vmatprep.subr.bf16.mxu1 %v5025_v20 }
 0x36b   : > { %4539 = vmatmul.mubr.bf16.vlgmr.msra.gmra.mxu0 %v5396_v50  ;;  %4559 = vmatmul.mubr.bf16.vlgmr.msra.gmra.mxu1 %v5396_v50 }
 0x36c   : > { %4564 = vmatprep.mubr.msk.bf16.mxu0 %vm5026_vm1, %v5025_v20  ;;  %4570 = vmatprep.mubr.msk.bf16.mxu1 %vm5026_vm1, %v5025_v20 }
 0x38b   : > { %v1299_v3 = vpop.f32.mrf.mxu0  ;;  %v1387_v4 = vpop.f32.mrf.mxu1 }
 0x38c   : > { %v1300_v29 = vadd.f32 %v3982_v21, %v1299_v3  ;;  %v1388_v30 = vadd.f32 %v3983_v22, %v1387_v4  ;;  %v4054_v4 = vld [vmem:[%s5929_s4] ss:$0 sm:$0xff]  ;;  %v4057_v21 = vld [vmem:[%s5929_s4 + $0x3] ss:$0 sm:$0xff] }
 0x38d   : > { %v4340_v5 = vpop.f32.mrf.mxu0  ;;  %v4360_v6 = vpop.f32.mrf.mxu1 }
 0x38e   : > { %v2457_v39 = vmul.f32 0.17677669, %v1300_v29  ;;  %v2458_v40 = vmul.f32 0.17677669, %v1388_v30  ;;  %v4055_v5 = vld [vmem:[%s5929_s4 + $0x1] ss:$0 sm:$0xff] }
 0x38f   : > { %v1302_v7 = vpop.f32.mrf.mxu0  ;;  %v1390_v8 = vpop.f32.mrf.mxu1 }
 0x390   : > { %v2461_v41 = vpack.c.bf16 %v2457_v39, %v2457_v39  ;;  %v2462_v42 = vpack.c.bf16 %v2458_v40, %v2458_v40 }
 0x391   : > { %v4341_v9 = vpop.f32.mrf.mxu0  ;;  %v4361_v10 = vpop.f32.mrf.mxu1 }
 0x3ab   : > { %v1475_v11 = vpop.f32.mrf.mxu0  ;;  %v1563_v50 = vpop.f32.mrf.mxu1 }
 0x3ac   : > { %v1476_v54 = vadd.f32 %v3984_v45, %v1475_v11  ;;  %v1564_v55 = vadd.f32 %v3985_v46, %v1563_v50 }
 0x3ad   : > { %v4380_v12 = vpop.f32.mrf.mxu0  ;;  %v4400_v13 = vpop.f32.mrf.mxu1 }
 0x3ae   : > { %v2459_v0 = vmul.f32 0.17677669, %v1476_v54  ;;  %v2460_v1 = vmul.f32 0.17677669, %v1564_v55 }
 0x3af   : > { %v1478_v14 = vpop.f32.mrf.mxu0  ;;  %v1566_v15 = vpop.f32.mrf.mxu1 }
 0x3b0   : > { %v2463_v2 = vpack.c.bf16 %v2459_v0, %v2459_v0  ;;  %v2464_v3 = vpack.c.bf16 %v2460_v1, %v2460_v1 }
 0x3b1   : > { %v4381_v16 = vpop.f32.mrf.mxu0  ;;  %v4401_v17 = vpop.f32.mrf.mxu1 }
 0x3cb   : > { %v1743_v23 = vpop.f32.mrf.mxu0  ;;  %v1831_v24 = vpop.f32.mrf.mxu1 }
 0x3cc   : > { %v1744_v25 = vadd.f32 %v4018_v18, %v1743_v23  ;;  %v1832_v26 = vadd.f32 %v4019_v19, %v1831_v24  ;;  %v4056_v19 = vld [vmem:[%s5929_s4 + $0x2] ss:$0 sm:$0xff] }
 0x3cd   : > { %v4420_v27 = vpop.f32.mrf.mxu0  ;;  %v4440_v28 = vpop.f32.mrf.mxu1 }
 0x3ce   : > { %v2465_v31 = vpack.c.bf16 %v1744_v25, %v1744_v25  ;;  %v2466_v32 = vpack.c.bf16 %v1832_v26, %v1832_v26 }
 0x3cf   : > { %v1746_v33 = vpop.f32.mrf.mxu0  ;;  %v1834_v34 = vpop.f32.mrf.mxu1 }
 0x3d0   : > { %v2481_v35 = vsel %vm2476_vm2, %v2465_v31, 0  ;;  %v2527_v36 = vsel %vm2476_vm2, %v2466_v32, 0 }
 0x3d1   : > { %v4421_v37 = vpop.f32.mrf.mxu0  ;;  %v4441_v38 = vpop.f32.mrf.mxu1  ;;  %4563 = vmatpush3.bf16.xpose.msra.mxu0 %v2481_v35  ;;  %4569 = vmatpush3.bf16.xpose.msra.mxu1 %v2527_v36  ;;  %v4090_v36 = vld [vmem:[#allocation3] ss:$0 sm:$0xff] }
 0x3d2   : > { %4574 = vmatprep.subr.bf16.mxu0 %v5025_v20  ;;  %4580 = vmatprep.subr.bf16.mxu1 %v5025_v20 }
 0x3d8   : > { %4565 = vmatmul.mubr.msk.bf16.vlgmr.msra.gmra.mxu0 %vm2476_vm2, %v2461_v41  ;;  %4571 = vmatmul.mubr.msk.bf16.vlgmr.msra.gmra.mxu1 %vm2476_vm2, %v2462_v42 }
 0x3d9   : > { %4576 = vmatprep.mubr.msk.bf16.mxu0 %vm5026_vm1, %v5025_v20  ;;  %4582 = vmatprep.mubr.msk.bf16.mxu1 %vm5026_vm1, %v5025_v20 }
 0x3eb   : > { %v1919_v47 = vpop.f32.mrf.mxu0  ;;  %v2007_v48 = vpop.f32.mrf.mxu1 }
 0x3ec   : > { %v1920_v49 = vadd.f32 %v4020_v43, %v1919_v47  ;;  %v2008_v51 = vadd.f32 %v4021_v44, %v2007_v48 }
 0x3ed   : > { %v4460_v52 = vpop.f32.mrf.mxu0  ;;  %v4480_v53 = vpop.f32.mrf.mxu1 }
 0x3ee   : > { %v2467_v56 = vpack.c.bf16 %v1920_v49, %v1920_v49  ;;  %v2468_v57 = vpack.c.bf16 %v2008_v51, %v2008_v51 }
 0x3ef   : > { %v1922_v58 = vpop.f32.mrf.mxu0  ;;  %v2010_v59 = vpop.f32.mrf.mxu1 }
 0x3f0   : > { %v2573_v60 = vsel %vm2476_vm2, %v2467_v56, 0  ;;  %v2619_v61 = vsel %vm2476_vm2, %v2468_v57, 0 }
 0x3f1   : > { %v4461_v62 = vpop.f32.mrf.mxu0  ;;  %v4481_v63 = vpop.f32.mrf.mxu1  ;;  %4575 = vmatpush3.bf16.xpose.msra.mxu0 %v2573_v60  ;;  %4581 = vmatpush3.bf16.xpose.msra.mxu1 %v2619_v61 }
 0x3f2   : > { %4586 = vmatprep.subr.bf16.mxu0 %v5025_v20  ;;  %4592 = vmatprep.subr.bf16.mxu1 %v5025_v20 }
 0x3f8   : > { %4577 = vmatmul.mubr.msk.bf16.vlgmr.msra.gmra.mxu0 %vm2476_vm2, %v2463_v2  ;;  %4583 = vmatmul.mubr.msk.bf16.vlgmr.msra.gmra.mxu1 %vm2476_vm2, %v2464_v3 }
 0x3f9   : > { %4588 = vmatprep.mubr.msk.bf16.mxu0 %vm5026_vm1, %v5025_v20  ;;  %4594 = vmatprep.mubr.msk.bf16.mxu1 %vm5026_vm1, %v5025_v20 }
 0x40b   : > { %v2187_v6 = vpop.f32.mrf.mxu0  ;;  %v2275_v7 = vpop.f32.mrf.mxu1 }
 0x40c   : > { %v2188_v8 = vadd.f32 %v4054_v4, %v2187_v6  ;;  %v2276_v9 = vadd.f32 %v4055_v5, %v2275_v7 }
 0x40d   : > { %v4500_v10 = vpop.f32.mrf.mxu0  ;;  %v4520_v11 = vpop.f32.mrf.mxu1 }
 0x40e   : > { %v2710_v50 = vpack.c.bf16 %v2188_v8, %v2188_v8  ;;  %v2711_v12 = vpack.c.bf16 %v2276_v9, %v2276_v9 }
 0x40f   : > { %v2190_v13 = vpop.f32.mrf.mxu0  ;;  %v2278_v14 = vpop.f32.mrf.mxu1 }
 0x410   : > { %v2719_v15 = vsel %vm2717_vm3, %v2710_v50, 0  ;;  %v2765_v16 = vsel %vm2717_vm3, %v2711_v12, 0 }
 0x411   : > { %v4501_v17 = vpop.f32.mrf.mxu0  ;;  %v4521_v18 = vpop.f32.mrf.mxu1  ;;  %4587 = vmatpush3.bf16.msra.mxu0 %v2719_v15  ;;  %4593 = vmatpush3.bf16.msra.mxu1 %v2765_v16 }
 0x412   : > { %4598 = vmatprep.subr.bf16.mxu0 %v5025_v20  ;;  %4604 = vmatprep.subr.bf16.mxu1 %v5025_v20 }
 0x42b   : > { %v2363_v22 = vpop.f32.mrf.mxu0  ;;  %v2451_v23 = vpop.f32.mrf.mxu1 }
 0x42c   : > { %v2364_v24 = vadd.f32 %v4056_v19, %v2363_v22  ;;  %v2452_v25 = vadd.f32 %v4057_v21, %v2451_v23 }
 0x42d   : > { %v4540_v26 = vpop.f32.mrf.mxu0  ;;  %v4560_v27 = vpop.f32.mrf.mxu1 }
 0x42e   : > { %v2712_v28 = vpack.c.bf16 %v2364_v24, %v2364_v24  ;;  %v2713_v29 = vpack.c.bf16 %v2452_v25, %v2452_v25 }
 0x42f   : > { %v2366_v30 = vpop.f32.mrf.mxu0  ;;  %v2454_v31 = vpop.f32.mrf.mxu1 }
 0x430   : > { %v5629_v32 = vsel %vm2717_vm3, %v2712_v28, 0  ;;  %v5632_v33 = vsel %vm2717_vm3, %v2713_v29, 0 }
 0x431   : > { %v4541_v34 = vpop.f32.mrf.mxu0  ;;  %v4561_v35 = vpop.f32.mrf.mxu1 }
 0x432   : > { %v4826_v34 = vld [vmem:[%s5298_s19 + $0x8] sm:$0xff]  }
 0x498   : > { %v2517_v37 = vpop.f32.mrf.mxu0  ;;  %v2563_v38 = vpop.f32.mrf.mxu1 }
 0x499   : > { %v2518_v39 = vadd.f32 %v4090_v36, %v2517_v37  ;;  %v2564_v42 = vadd.f32 %v4090_v36, %v2563_v38  ;;  %v4829_v37 = vld [vmem:[%s5298_s19 + $0x10] sm:$0xff]  }
 0x49a   : > { %v4566_v40 = vpop.f32.mrf.mxu0  ;;  %v4572_v41 = vpop.f32.mrf.mxu1 }
 0x49b   : > { %v2662_v43 = vsel %vm2661_vm4, %v2518_v39, -inf  ;;  %v2665_v48 = vsel %vm2661_vm4, %v2564_v42, -inf }
 0x49c   : > { %v2566_v44 = vpop.f32.mrf.mxu1  ;;  %2663 = vmax.xlane.f32.xlu1 %v2662_v43  ;;  %v2520_v45 = vpop.f32.mrf.mxu0 }
 0x49d   : > { %v4831_v44 = vld [vmem:[%s5298_s19 + $0x38] sm:$0xff]   ;;  %v4832_v45 = vld [vmem:[%s5298_s19 + $0x20] sm:$0xff]  }
 0x49e   : > { %v4567_v46 = vpop.f32.mrf.mxu0  ;;  %v4573_v47 = vpop.f32.mrf.mxu1 }
 0x4a0   : > { %2666 = vmax.xlane.f32.xlu1 %v2665_v48 }
 0x4b8   : > { %v2609_v49 = vpop.f32.mrf.mxu0  ;;  %v2655_v51 = vpop.f32.mrf.mxu1 }
 0x4b9   : > { %v2610_v52 = vadd.f32 %v4090_v36, %v2609_v49  ;;  %v2656_v53 = vadd.f32 %v4090_v36, %v2655_v51  ;;  %v4828_v36 = vld [vmem:[%s5298_s19 + $0x18] sm:$0xff]   ;;  %v4833_v51 = vld [vmem:[%s5298_s19 + $0x30] sm:$0xff]  }
 0x4ba   : > { %v4578_v54 = vpop.f32.mrf.mxu0  ;;  %v4584_v55 = vpop.f32.mrf.mxu1 }
 0x4bb   : > { %v2671_v56 = vsel %vm2661_vm4, %v2656_v53, -inf  ;;  %v2668_v57 = vsel %vm2661_vm4, %v2610_v52, -inf }
 0x4bc   : > { %v2658_v58 = vpop.f32.mrf.mxu1  ;;  %2672 = vmax.xlane.f32.xlu1 %v2671_v56  ;;  %2669 = vmax.xlane.f32.xlu0 %v2668_v57  ;;  %v2612_v59 = vpop.f32.mrf.mxu0 }
 0x4be   : > { %v4579_v60 = vpop.f32.mrf.mxu0  ;;  %v4585_v61 = vpop.f32.mrf.mxu1 }
 0x525   : > { %v2664_v62 = vpop.xlane.xlu1 %2663 }
 0x526   : > { %v2674_v63 = vsub.f32 %v2518_v39, %v2664_v62  ;;  %v4830_v39 = vld [vmem:[%s5298_s19 + $0x28] sm:$0xff]  }
 0x528   : > { %v2678_v0 = vmul.f32 1.442695, %v2674_v63 }
 0x529   : > { %v2667_v1 = vpop.xlane.xlu1 %2666 }
 0x52a   : > { %4876 = vpow2.f32 %v2678_v0  ;;  %v2675_v2 = vsub.f32 %v2564_v42, %v2667_v1 }
 0x52c   : > { %v2680_v3 = vmul.f32 1.442695, %v2675_v2 }
 0x52e   : > { %4878 = vpow2.f32 %v2680_v3 }
 0x537   : > { %v4877_v4 = vpop.eup %4876 }
 0x538   : > { %v2686_v5 = vsel %vm2661_vm4, %v4877_v4, 0.0 }
 0x539   : > { %2687 = vadd.xlane.f32.xlu0 %v2686_v5 }
 0x53b   : > { %v4879_v6 = vpop.eup %4878 }
 0x53c   : > { %v2689_v7 = vsel %vm2661_vm4, %v4879_v6, 0.0 }
 0x53d   : > { %2690 = vadd.xlane.f32.xlu1 %v2689_v7 }
 0x545   : > { %v2673_v8 = vpop.xlane.xlu1 %2672  ;;  %v2670_v9 = vpop.xlane.xlu0 %2669 }
 0x546   : > { %v2677_v10 = vsub.f32 %v2656_v53, %v2673_v8  ;;  %v2676_v11 = vsub.f32 %v2610_v52, %v2670_v9 }
 0x548   : > { %v2684_v50 = vmul.f32 1.442695, %v2677_v10  ;;  %v2682_v12 = vmul.f32 1.442695, %v2676_v11  ;;  %v4111_v11 = vld [vmem:[%s5930_s28] ss:$0 sm:$0xff] }
 0x54a   : > { %4880 = vpow2.f32 %v2684_v50 }
 0x54b   : > { %4882 = vpow2.f32 %v2682_v12 }
 0x557   : > { %v4881_v13 = vpop.eup %4880 }
 0x558   : > { %v4883_v14 = vpop.eup %4882  ;;  %v2695_v15 = vsel %vm2661_vm4, %v4881_v13, 0.0 }
 0x559   : > { %2696 = vadd.xlane.f32.xlu1 %v2695_v15  ;;  %v2692_v16 = vsel %vm2661_vm4, %v4883_v14, 0.0 }
 0x55a   : > { %2693 = vadd.xlane.f32.xlu0 %v2692_v16 }
 0x5c2   : > { %v2688_v17 = vpop.xlane.xlu0 %2687 }
 0x5c3   : > { %4884 = vrcp.f32 %v2688_v17 }
 0x5c6   : > { %v2691_v18 = vpop.xlane.xlu1 %2690 }
 0x5c7   : > { %4886 = vrcp.f32 %v2691_v18  ;;  %v4898_v18 = vld [vmem:[#allocation2] sm:$0xff] }
 0x5d0   : > { %v4885_v19 = vpop.eup %4884 }
 0x5d1   : > { %v2702_v21 = vmul.f32 %v4885_v19, %v4877_v4 }
 0x5d3   : > { %v2706_v22 = vpack.c.bf16 %v2702_v21, %v2702_v21  ;;  %v4834_v21 = vld [vmem:[%s5312_s6 + $0x70] ss:$8 sps:$4 sm:$0xff]  }
 0x5d4   : > { %v4887_v23 = vpop.eup %4886 }
 0x5d5   : > { %4589 = vmatmul.mubr.msk.bf16.vlgmr.msra.gmra.mxu0 %vm2661_vm4, %v2706_v22  ;;  %v2703_v24 = vmul.f32 %v4887_v23, %v4879_v6  ;;  %v4836_v22 = vld [vmem:[%s5312_s6 + $0x74] ss:$8 sps:$4 sm:$0xff]   ;;  %v4839_v23 = vld [vmem:[%s5312_s6 + $0x64] ss:$8 sps:$4 sm:$0xff]  }
 0x5d6   : > { %4599 = vmatpush3.bf16.msra.mxu0 %v5629_v32  ;;  %4600 = vmatprep.mubr.msk.bf16.mxu0 %vm5026_vm1, %v5025_v20 }
 0x5d7   : > { %v2707_v25 = vpack.c.bf16 %v2703_v24, %v2703_v24  ;;  %4610 = vmatprep.subr.bf16.mxu0 %v5025_v20  ;;  %v4837_v24 = vld [vmem:[%s5312_s6 + $0x60] ss:$8 sps:$4 sm:$0xff]  }
 0x5d9   : > { %4595 = vmatmul.mubr.msk.bf16.vlgmr.msra.gmra.mxu1 %vm2661_vm4, %v2707_v25 }
 0x5da   : > { %4605 = vmatpush3.bf16.msra.mxu1 %v5632_v33  ;;  %4606 = vmatprep.mubr.msk.bf16.mxu1 %vm5026_vm1, %v5025_v20  ;;  %v4827_v33 = vld [vmem:[%s5298_s19] sm:$0xff]  }
 0x5db   : > { %4618 = vmatprep.subr.bf16.mxu1 %v5025_v20 }
 0x5e2   : > { %v2697_v26 = vpop.xlane.xlu1 %2696 }
 0x5e3   : > { %4888 = vrcp.f32 %v2697_v26  ;;  %v2694_v27 = vpop.xlane.xlu0 %2693 }
 0x5e4   : > { %4890 = vrcp.f32 %v2694_v27 }
 0x5f0   : > { %v4889_v28 = vpop.eup %4888 }
 0x5f1   : > { %v4891_v29 = vpop.eup %4890  ;;  %v2705_v30 = vmul.f32 %v4889_v28, %v4881_v13 }
 0x5f2   : > { %v2704_v31 = vmul.f32 %v4891_v29, %v4883_v14  ;;  %v4842_v29 = vld [vmem:[%s5312_s6 + $0x54] ss:$8 sps:$4 sm:$0xff]  }
 0x5f3   : > { %v2709_v32 = vpack.c.bf16 %v2705_v30, %v2705_v30  ;;  %v4840_v30 = vld [vmem:[%s5312_s6 + $0x50] ss:$8 sps:$4 sm:$0xff]  }
 0x5f4   : > { %v2708_v35 = vpack.c.bf16 %v2704_v31, %v2704_v31  ;;  %v4843_v31 = vld [vmem:[%s5312_s6 + $0x40] ss:$8 sps:$4 sm:$0xff]  }
 0x5f5   : > { %4607 = vmatmul.mubr.msk.bf16.vlgmr.msra.gmra.mxu1 %vm2661_vm4, %v2709_v32  ;;  %v4845_v32 = vld [vmem:[%s5312_s6 + $0x44] ss:$8 sps:$4 sm:$0xff]  }
 0x5f6   : > { %4601 = vmatmul.mubr.msk.bf16.vlgmr.msra.gmra.mxu0 %vm2661_vm4, %v2708_v35  ;;  %4622 = vmatprep.mubr.msk.bf16.mxu1 %vm5026_vm1, %v5025_v20  ;;  %v4846_v35 = vld [vmem:[%s5312_s6 + $0x30] ss:$8 sps:$4 sm:$0xff]  }
 0x5f7   : > { %4611 = vmatpush3.bf16.msra.mxu0 %v4826_v34  ;;  %4614 = vmatprep.mubr.msk.bf16.mxu0 %vm5026_vm1, %v5025_v20  ;;  %v4848_v34 = vld [vmem:[%s5312_s6 + $0x34] ss:$8 sps:$4 sm:$0xff]  }
 0x5f8   : > { %4612 = vmatprep.subr.bf16.mxu0 %v5025_v20  ;;  %4619 = vmatpush3.bf16.msra.mxu1 %v4828_v36  ;;  %v5027_v36 = vmov 0  }
 0x5f9   : > { %4620 = vmatprep.subr.bf16.mxu1 %v5025_v20 }
 0x5fb   : > { %4613 = vmatpush3.bf16.msra.mxu0 %v4827_v33  ;;  %v4851_v33 = vld [vmem:[%s5312_s6 + $0x24] ss:$8 sps:$4 sm:$0xff]  }
 0x5fc   : > { %4626 = vmatprep.subr.bf16.mxu0 %v5025_v20  ;;  %4621 = vmatpush3.bf16.msra.mxu1 %v4829_v37  ;;  %v4849_v37 = vld [vmem:[%s5312_s6 + $0x20] ss:$8 sps:$4 sm:$0xff]  }
 0x5fd   : > { %4634 = vmatprep.subr.bf16.mxu1 %v5025_v20 }
 0x695   : > { %v2755_v38 = vpop.f32.mrf.mxu0 }
 0x696   : > { %v2899_v40 = vpack.c.bf16 %v2755_v38, %v2755_v38  ;;  %v4854_v38 = vld [vmem:[%s5312_s6 + $0x14] ss:$8 sps:$4 sm:$0xff]  }
 0x697   : > { %v4590_v41 = vpop.f32.mrf.mxu0 }
 0x698   : > { %4615 = vmatmul.mubr.msk.bf16.vlgmr.msra.gmra.mxu0 %vm2476_vm2, %v2899_v40  ;;  %v4857_v40 = vld [vmem:[%s5312_s6 + $0x4] ss:$8 sps:$4 sm:$0xff]   ;;  %v4855_v41 = vld [vmem:[%s5312_s6] ss:$8 sps:$4 sm:$0xff]  }
 0x699   : > { %v2758_v42 = vpop.f32.mrf.mxu0  ;;  %v2801_v43 = vpop.f32.mrf.mxu1  ;;  %4627 = vmatpush3.bf16.msra.mxu0 %v4830_v39  ;;  %4630 = vmatprep.mubr.msk.bf16.mxu0 %vm5026_vm1, %v5025_v20  ;;  %v4852_v39 = vld [vmem:[%s5312_s6 + $0x10] ss:$8 sps:$4 sm:$0xff]  }
 0x69a   : > { %v2900_v46 = vpack.c.bf16 %v2801_v43, %v2801_v43  ;;  %4628 = vmatprep.subr.bf16.mxu0 %v5025_v20 }
 0x69b   : > { %v4591_v47 = vpop.f32.mrf.mxu0  ;;  %v4596_v48 = vpop.f32.mrf.mxu1 }
 0x69c   : > { %4623 = vmatmul.mubr.msk.bf16.vlgmr.msra.gmra.mxu1 %vm2476_vm2, %v2900_v46  ;;  %v4112_v46 = vld [vmem:[%s5932_s0] ss:$0 sm:$0xff] }
 0x69d   : > { %v2804_v49 = vpop.f32.mrf.mxu1  ;;  %4635 = vmatpush3.bf16.msra.mxu1 %v4831_v44  ;;  %4629 = vmatpush3.bf16.msra.mxu0 %v4832_v45  ;;  %v4113_v48 = vld [vmem:[%s5934_s21] ss:$0 sm:$0xff] }
 0x69e   : > { %4636 = vmatprep.subr.bf16.mxu1 %v5025_v20  ;;  %4638 = vmatprep.mubr.msk.bf16.mxu1 %vm5026_vm1, %v5025_v20 }
 0x69f   : > { %v4597_v52 = vpop.f32.mrf.mxu1  ;;  %3287 = vmatprep.subr.bf16.mxu0 %v4836_v22 }
 0x6a1   : > { %4637 = vmatpush3.bf16.msra.mxu1 %v4833_v51 }
 0x6b5   : > { %v2893_v53 = vpop.f32.mrf.mxu1 }
 0x6b6   : > { %v2847_v54 = vpop.f32.mrf.mxu0  ;;  %v2902_v55 = vpack.c.bf16 %v2893_v53, %v2893_v53  ;;  %v4858_v53 = vld [vmem:[%s5323_s10 + $0x78] sm:$0xff]  }
 0x6b7   : > { %v2901_v56 = vpack.c.bf16 %v2847_v54, %v2847_v54  ;;  %v4608_v57 = vpop.f32.mrf.mxu1  ;;  %v4859_v54 = vld [vmem:[%s5323_s10 + $0x38] sm:$0xff]   ;;  %4298 = vmatprep.subr.bf16.mxu1 %v4858_v53 }
 0x6b8   : > { %v4602_v58 = vpop.f32.mrf.mxu0  ;;  %4639 = vmatmul.mubr.msk.bf16.vlgmr.msra.gmra.mxu1 %vm2476_vm2, %v2902_v55  ;;  %v4860_v55 = vld [vmem:[%s5323_s10 + $0x70] sm:$0xff]   ;;  %v4862_v57 = vld [vmem:[%s5323_s10 + $0x68] sm:$0xff]  }
 0x6b9   : > { %4631 = vmatmul.mubr.msk.bf16.vlgmr.msra.gmra.mxu0 %vm2476_vm2, %v2901_v56  ;;  %v2896_v59 = vpop.f32.mrf.mxu1  ;;  %4299 = vmatpush3.bf16.msra.mxu1 %v4859_v54  ;;  %v4861_v56 = vld [vmem:[%s5323_s10 + $0x30] sm:$0xff]   ;;  %v4863_v58 = vld [vmem:[%s5323_s10 + $0x28] sm:$0xff]  }
 0x6ba   : > { %v2850_v60 = vpop.f32.mrf.mxu0  ;;  %3288 = vmatpush1.bf16.msra.mxu0 %v4834_v21  ;;  %3319 = vmatprep.mubr.bf16.mxu0 %v5027_v36  ;;  %v4864_v59 = vld [vmem:[%s5323_s10 + $0x60] sm:$0xff]  }
 0x6bb   : > { %v4609_v61 = vpop.f32.mrf.mxu1  ;;  %3289 = vmatprep.subr.bf16.mxu0 %v4839_v23  ;;  %4300 = vmatprep.subr.bf16.mxu1 %v4860_v55  ;;  %v4865_v60 = vld [vmem:[%s5323_s10 + $0x20] sm:$0xff]  }
 0x6bc   : > { %v4603_v62 = vpop.f32.mrf.mxu0  ;;  %v4866_v61 = vld [vmem:[%s5323_s10 + $0x58] sm:$0xff]  }
 0x6bd   : > { %4301 = vmatpush3.bf16.msra.mxu1 %v4861_v56  ;;  %v4867_v62 = vld [vmem:[%s5323_s10 + $0x18] sm:$0xff]  }
 0x6be   : > { %3290 = vmatpush1.bf16.msra.mxu0 %v4837_v24  ;;  %4302 = vmatprep.subr.bf16.mxu1 %v4862_v57 }
 0x6bf   : > { %3291 = vmatprep.subr.bf16.mxu0 %v4842_v29 }
 0x6c1   : > { %4303 = vmatpush3.bf16.msra.mxu1 %v4863_v58 }
 0x6c2   : > { %3292 = vmatpush1.bf16.msra.mxu0 %v4840_v30  ;;  %4304 = vmatprep.subr.bf16.mxu1 %v4864_v59 }
 0x6c3   : > { %3293 = vmatprep.subr.bf16.mxu0 %v4845_v32 }
 0x6c5   : > { %4305 = vmatpush3.bf16.msra.mxu1 %v4865_v60 }
 0x6c6   : > { %3294 = vmatpush1.bf16.msra.mxu0 %v4843_v31  ;;  %4306 = vmatprep.subr.bf16.mxu1 %v4866_v61 }
 0x6c7   : > { %3295 = vmatprep.subr.bf16.mxu0 %v4848_v34 }
 0x6c9   : > { %4307 = vmatpush3.bf16.msra.mxu1 %v4867_v62 }
 0x6ca   : > { %3296 = vmatpush1.bf16.msra.mxu0 %v4846_v35 }
 0x6cb   : > { %3297 = vmatprep.subr.bf16.mxu0 %v4851_v33 }
 0x6ce   : > { %3298 = vmatpush1.bf16.msra.mxu0 %v4849_v37 }
 0x6cf   : > { %3299 = vmatprep.subr.bf16.mxu0 %v4854_v38 }
 0x6d2   : > { %3300 = vmatpush1.bf16.msra.mxu0 %v4852_v39  ;;  %v4130_v39 = vld [vmem:[%s1054_s26] ss:$0 sm:$0xff] }
 0x6d3   : > { %3301 = vmatprep.subr.bf16.mxu0 %v4857_v40 }
 0x6d6   : > { %3302 = vmatpush1.bf16.msra.mxu0 %v4855_v41 }
 0x758   : > { %v2968_v63 = vpop.f32.mrf.mxu0 }
 0x75a   : > { %v4616_v0 = vpop.f32.mrf.mxu0 }
 0x75b   : > { %v4869_v0 = vld [vmem:[%s5323_s10 + $0x10] sm:$0xff]  }
 0x75c   : > { %v2971_v20 = vpop.f32.mrf.mxu0  ;;  %v3023_v1 = vpop.f32.mrf.mxu1 }
 0x75d   : > { %v3139_v6 = vadd.f32 %v3023_v1, %v2968_v63  ;;  %v4868_v63 = vld [vmem:[%s5323_s10 + $0x50] sm:$0xff]   ;;  %v4870_v20 = vld [vmem:[%s5323_s10 + $0x48] sm:$0xff]  }
 0x75e   : > { %v4617_v2 = vpop.f32.mrf.mxu0  ;;  %v4624_v3 = vpop.f32.mrf.mxu1  ;;  %4308 = vmatprep.subr.bf16.mxu1 %v4868_v63  ;;  %v4871_v1 = vld [vmem:[%s5323_s10 + $0x8] sm:$0xff]  }
 0x75f   : > { %4309 = vmatpush3.bf16.msra.mxu1 %v4869_v0  ;;  %v4872_v2 = vld [vmem:[%s5323_s10 + $0x40] sm:$0xff]  }
 0x760   : > { %v3026_v4 = vpop.f32.mrf.mxu1  ;;  %4310 = vmatprep.subr.bf16.mxu1 %v4870_v20  ;;  %v4873_v3 = vld [vmem:[%s5323_s10] sm:$0xff]  }
 0x761   : > { %v3197_v4 = vlaneseq }
 0x762   : > { %v4625_v5 = vpop.f32.mrf.mxu1 }
 0x763   : > { %4311 = vmatpush3.bf16.msra.mxu1 %v4871_v1  ;;  %v3198_v5 = vshrl.u32 %v3197_v4, 7 }
 0x764   : > { %4312 = vmatprep.subr.bf16.mxu1 %v4872_v2 }
 0x767   : > { %4313 = vmatpush3.bf16.msra.mxu1 %v4873_v3 }
 0x778   : > { %v3133_v7 = vpop.f32.mrf.mxu1 }
 0x779   : > { %v3078_v8 = vpop.f32.mrf.mxu0 }
 0x77a   : > { %v3140_v9 = vadd.f32 %v3139_v6, %v3078_v8  ;;  %v4640_v10 = vpop.f32.mrf.mxu1  ;;  %v3199_v6 = vsub.s32 0, %v3198_v5  ;;  %v3203_v8 = vsub.s32 1, %v3198_v5 }
 0x77b   : > { %v4632_v50 = vpop.f32.mrf.mxu0 }
 0x77c   : > { %v3141_v12 = vadd.f32 %v3140_v9, %v3133_v7  ;;  %v3136_v13 = vpop.f32.mrf.mxu1  ;;  %v3195_v7 = vld [vmem:[%s5318_s22] sm:$0x3] }
 0x77d   : > { %v3081_v14 = vpop.f32.mrf.mxu0  ;;  %v3200_v9 = vrot.slane %v3195_v7, %v3199_v6  ;;  %v3204_v10 = vrot.slane %v3195_v7, %v3203_v8 }
 0x77e   : > { %v3149_v15 = vadd.f32 %v4111_v11, %v3141_v12  ;;  %v4641_v16 = vpop.f32.mrf.mxu1 }
 0x77f   : > { %v4633_v17 = vpop.f32.mrf.mxu0 }
 0x780   : > { %v5685_v19 = vadd.f32 %v4898_v18, %v3149_v15 }
 0x782   : > { %3153 = vadd.xlane.f32.xlu0 %v5685_v19 }
 0x80b   : > { %v3154_v25 = vpop.xlane.xlu0 %3153 }
 0x80c   : > { %v3155_v26 = vmul.f32 0.0078125, %v3154_v25 }
 0x80e   : > { %v3156_v27 = vsub.f32 %v5685_v19, %v3155_v26 }
 0x810   : > { %v3157_v28 = vmul.f32 %v3156_v27, %v3156_v27 }
 0x812   : > { %3158 = vadd.xlane.f32.xlu1 %v3157_v28 }
 0x89b   : > { %v3159_v42 = vpop.xlane.xlu1 %3158 }
 0x89c   : > { %v3160_v43 = vmul.f32 0.0078125, %v3159_v42 }
 0x89e   : > { %v3161_v44 = vadd.f32 1e-05, %v3160_v43 }
 0x8a0   : > { %4892 = vrsqrt.f32 %v3161_v44 }
 0x8ad   : > { %v4893_v45 = vpop.eup %4892 }
 0x8ae   : > { %v3163_v47 = vmul.f32 %v4893_v45, %v3156_v27 }
 0x8b0   : > { %v3170_v49 = vmul.f32 %v4112_v46, %v3163_v47 }
 0x8b2   : > { %v3177_v51 = vadd.f32 %v4113_v48, %v3170_v49 }
 0x8b4   : > { %v3178_v52 = vpack.c.bf16 %v3177_v51, %v3177_v51 }
 0x8b6   : > { %3320 = vmatmul.mubr.bf16.vlgmr.msra.gmra.mxu0 %v3178_v52 }
 0x976   : > { %v3321_v11 = vpop.f32.mrf.mxu0 }
 0x977   : > { %v3322_v50 = vadd.f32 %v3321_v11, %v3200_v9 }
 0x978   : > { %v3323_v12 = vpop.f32.mrf.mxu0 }
 0x979   : > { %v3328_v13 = vmul.f32 %v3322_v50, %v3322_v50  ;;  %v3324_v14 = vadd.f32 %v3323_v12, %v3204_v10 }
 0x97a   : > { %v3325_v15 = vpop.f32.mrf.mxu0 }
 0x97b   : > { %v3330_v16 = vmul.f32 %v3328_v13, %v3322_v50  ;;  %v3329_v17 = vmul.f32 %v3324_v14, %v3324_v14 }
 0x97c   : > { %v3326_v18 = vpop.f32.mrf.mxu0 }
 0x97d   : > { %v3332_v21 = vmul.f32 0.044715, %v3330_v16  ;;  %v3331_v22 = vmul.f32 %v3329_v17, %v3324_v14 }
 0x97f   : > { %v3334_v23 = vadd.f32 %v3332_v21, %v3322_v50  ;;  %v3333_v24 = vmul.f32 0.044715, %v3331_v22 }
 0x981   : > { %v3336_v25 = vmul.f32 0.7978846, %v3334_v23  ;;  %v3335_v26 = vadd.f32 %v3333_v24, %v3324_v14 }
 0x983   : > { %4894 = vtanh.f32 %v3336_v25  ;;  %v3337_v27 = vmul.f32 0.7978846, %v3335_v26 }
 0x985   : > { %4896 = vtanh.f32 %v3337_v27 }
 0x990   : > { %v4895_v28 = vpop.eup %4894 }
 0x991   : > { %v3340_v29 = vadd.f32 1.0, %v4895_v28 }
 0x992   : > { %v4897_v30 = vpop.eup %4896 }
 0x993   : > { %v3341_v31 = vadd.f32 1.0, %v4897_v30  ;;  %v3342_v32 = vmul.f32 0.5, %v3340_v29 }
 0x995   : > { %v3343_v34 = vmul.f32 0.5, %v3341_v31  ;;  %v3344_v35 = vmul.f32 %v3342_v32, %v3322_v50 }
 0x997   : > { %v3345_v33 = vmul.f32 %v3343_v34, %v3324_v14  ;;  %v3346_v37 = vpack.c.bf16 %v3344_v35, %v3344_v35 }
 0x999   : > { %v3347_v36 = vpack.c.bf16 %v3345_v33, %v3345_v33 }
 0x99b   : > { %3515 = vmatprep.mubr.bf16.mxu1 %v3347_v36 }
 0x99c   : > { %3516 = vmatmul.mubr.bf16.vlgmr.msra.gmra.mxu1 %v3346_v37 }
 0xa5c   : > { %v4314_v38 = vpop.f32.mrf.mxu1 }
 0xa5e   : > { %v4315_v40 = vpop.f32.mrf.mxu1 }
 0xa5f   : > { %v4316_v41 = vadd.f32 %v4315_v40, %v4314_v38 }
 0xa60   : > { %v4317_v42 = vpop.f32.mrf.mxu1 }
 0xa61   : > { %v3518_v43 = vadd.f32 %v4316_v41, %v4130_v39  ;;  %3528 = sbr.rel (%p4147_p1) target bundleno = 3164 (0xc5c), region = 120 }
 0xa62   : > { %v4318_v44 = vpop.f32.mrf.mxu1 }
 0xa63   : > { %v3523_v45 = vadd.f32 %v3518_v43, %v5685_v19 }
 0xa65   : > { %3524 = vst [vmem:[#allocation2] sm:$0xff] %v3523_v45 }
 0xa66   : > { %3531 = vadd.xlane.f32.xlu0 %v3523_v45  ;;  %v5028_v51 = vmov 0.0   ;;  %vm5029_vm5 = vmmov 0   ;;  %v4148_v55 = vld [vmem:[%s5937_s9] ss:$0 sm:$0xff] }
 0xa67   : > { %4642 = vmatprep.subr.mxu0 %v5028_v51  ;;  %4644 = vmatprep.mubr.msk.f32.mxu0 %vm5029_vm5, %v5028_v51  ;;  %v4149_v57 = vld [vmem:[%s5938_s12] ss:$0 sm:$0xff] }
 0xa68   : > { %v3557_v60 = vld [vmem:[%s5940_s25] sm:$0x1] }
 0xaef   : > { %v3532_v46 = vpop.xlane.xlu0 %3531 }
 0xaf0   : > { %v3533_v47 = vmul.f32 0.0078125, %v3532_v46 }
 0xaf2   : > { %v3534_v48 = vsub.f32 %v3523_v45, %v3533_v47 }
 0xaf4   : > { %v3535_v49 = vmul.f32 %v3534_v48, %v3534_v48 }
 0xaf6   : > { %3536 = vadd.xlane.f32.xlu0 %v3535_v49 }
 0xb7f   : > { %v3537_v52 = vpop.xlane.xlu0 %3536 }
 0xb80   : > { %v3538_v53 = vmul.f32 0.0078125, %v3537_v52 }
 0xb82   : > { %v3539_v19 = vadd.f32 1e-05, %v3538_v53 }
 0xb84   : > { %4899 = vrsqrt.f32 %v3539_v19 }
 0xb91   : > { %v4900_v54 = vpop.eup %4899 }
 0xb92   : > { %v3541_v56 = vmul.f32 %v4900_v54, %v3534_v48 }
 0xb94   : > { %v3548_v58 = vmul.f32 %v4148_v55, %v3541_v56 }
 0xb96   : > { %v3555_v59 = vadd.f32 %v4149_v57, %v3548_v58 }
 0xb98   : > { %3556 = vst [vmem:[%s5331_s3] sm:$0xff] %v3555_v59  ;;  %4643 = vmatpush3.msra.mxu0 %v3555_v59 }
 0xb99   : > { %4645 = vmatmul.mubr.msk.f32.vlgmr.msra.gmra.mxu0 %vm2661_vm4, %v3557_v60 }
 0xc59   : > { %v3627_v61 = vpop.f32.mrf.mxu0 }
 0xc5a   : > { %3631 = vst [vmem:[%s980_s13] sm:$0x1] %v3627_v61 }
 0xc5b   : > { %v4646_v62 = vpop.f32.mrf.mxu0 }
 0xc5c PF: > { %s5941_s4 = sld [smem:[#allocation14_spill]]  ;;  %s3650_s5 = sshll.u32 %s5331_s3, 4  ;;  %s3651_s5 = int_to_ptr.vmem [resolvable:$true] %s3650_s5 }
 0xc5d   : > { %s5943_s19 = sld [smem:[#allocation46_spill]]  ;;  %s3633_s0 = scalar_lea.sflag [#allocation5], %s5227_s30 }
 0xc5e   : > { %s4901_s23 = scalar_lea.vmem %s3651_s5, 128  ;;  %s5030_s6 = smov [#allocation4]  }
 0xc5f   : > { %p4902_p2 = scmp.ne.s32.totalorder %s3651_s5, %s4901_s23  ;;  %s4905_s29 = sshll.u32 %s5030_s6, 4  ;;  %s4906_s29 = int_to_ptr.vmem [resolvable:$false] %s4905_s29 }
 0xc60   : > { %s4907_s21 = scalar_lea.vmem %s4906_s29, 256  ;;  %p4908_p6 = scmp.lt.s32.totalorder %s3651_s5, %s4906_s29 }
 0xc61   : > { %p4903_p4 = pnand %p4902_p2, %p5206_p3  ;;  %p4909_p7 = scmp.lt.s32.totalorder %s4907_s21, %s4901_s23 }
 0xc62   : > { %s4152_s18 = sshll.u32 %s5941_s4, 7 }
 0xc63   : > { %s3648_s24 = scalar_lea.hbm %s5943_s19, %s4152_s18  ;;  %p4904_p5 = pneg %p4903_p4 }
 0xc64   : > { %p4910_p8 = por %p4909_p7, %p4908_p6 }
 0xc66   : > { %p4911_p10 = pnand %p4910_p8, %p4904_p5 }
 0xc68   : > { %4914 = shalt.err (!%p4911_p10)
}
 0xc69   : > { %s4915_s22 = scalar_lea.hbm %s3648_s24, 128  ;;  %s4919_s27 = scalar_lea.hbm %s5943_s19, 256 }
 0xc6a   : > { %p4916_p11 = scmp.ne.s32.totalorder %s3648_s24, %s4915_s22  ;;  %p4920_p0 = scmp.lt.s32.totalorder %s3648_s24, %s5943_s19 }
 0xc6b   : > { %p4921_p1 = scmp.lt.s32.totalorder %s4919_s27, %s4915_s22 }
 0xc6c   : > { %p4917_p12 = pnand %p4916_p11, %p5206_p3 }
 0xc6d   : > { %p4922_p2 = por %p4921_p1, %p4920_p0 }
 0xc6e   : > { %p4918_p13 = pneg %p4917_p12 }
 0xc70   : > { %p4923_p4 = pnand %p4922_p2, %p4918_p13 }
 0xc72   : > { %4926 = shalt.err (!%p4923_p4)
}
 0xc73   : > { %4647 = dma.vmem_to_hbm [thread:$0]  (%p5206_p3), %s3651_s5, 128, %s3648_s24, %s3633_s0  }
 0xc74   : > { %s4153_s26 = sshll.u32 %s5941_s4, 4  ;;  %s3663_s9 = sshll.u32 %s980_s13, 4  ;;  %s3664_s9 = int_to_ptr.vmem [resolvable:$true] %s3663_s9 }
 0xc75   : > { %s5944_s12 = sld [smem:[#allocation47_spill]]  ;;  %s3638_s15 = scalar_lea.sflag [#allocation7], %s5227_s30 }
 0xc76   : > { %s4927_s20 = scalar_lea.vmem %s3664_s9, 16  ;;  %s5031_s25 = smov [#allocation6]  }
 0xc77   : > { %p4928_p5 = scmp.ne.s32.totalorder %s3664_s9, %s4927_s20  ;;  %s4931_s18 = sshll.u32 %s5031_s25, 4  ;;  %s4932_s18 = int_to_ptr.vmem [resolvable:$false] %s4931_s18 }
 0xc78   : > { %s4933_s28 = scalar_lea.vmem %s4932_s18, 32  ;;  %p4934_p8 = scmp.lt.s32.totalorder %s3664_s9, %s4932_s18 }
 0xc79   : > { %p4929_p6 = pnand %p4928_p5, %p5206_p3  ;;  %p4935_p10 = scmp.lt.s32.totalorder %s4933_s28, %s4927_s20 }
 0xc7b   : > { %s3661_s14 = scalar_lea.hbm %s5944_s12, %s4153_s26  ;;  %p4930_p7 = pneg %p4929_p6 }
 0xc7c   : > { %p4936_p11 = por %p4935_p10, %p4934_p8 }
 0xc7e   : > { %p4937_p12 = pnand %p4936_p11, %p4930_p7 }
 0xc80   : > { %4940 = shalt.err (!%p4937_p12)
}
 0xc81   : > { %s4941_s13 = scalar_lea.hbm %s3661_s14, 16  ;;  %s4945_s2 = scalar_lea.hbm %s5944_s12, 32 }
 0xc82   : > { %p4942_p13 = scmp.ne.s32.totalorder %s3661_s14, %s4941_s13  ;;  %p4946_p2 = scmp.lt.s32.totalorder %s3661_s14, %s5944_s12 }
 0xc83   : > { %p4947_p4 = scmp.lt.s32.totalorder %s4945_s2, %s4941_s13 }
 0xc84   : > { %p4943_p0 = pnand %p4942_p13, %p5206_p3 }
 0xc85   : > { %p4948_p5 = por %p4947_p4, %p4946_p2 }
 0xc86   : > { %p4944_p1 = pneg %p4943_p0 }
 0xc88   : > { %p4949_p6 = pnand %p4948_p5, %p4944_p1 }
 0xc8a   : > { %4952 = shalt.err (!%p4949_p6)
}
 0xc8b   : > { %4648 = dma.vmem_to_hbm [thread:$0]  (%p5206_p3), %s3664_s9, 16, %s3661_s14, %s3638_s15  }
 0xc8c PF: > { %s5945_s0 = sld [smem:[#allocation17_spill]] }
 0xc8d   : > { %s5946_s23 = sld [smem:[#allocation10_spill]] }
 0xc92   : > { %p4658_p7 = scmp.ge.s32.totalorder %s5945_s0, 2 }
 0xc93   : > { %s3675_s29 = sand.u32 1, %s5946_s23  }
 0xc94   : > { %p4652_p8 = pnand %p4658_p7, %p5216_p9  ;;  %s3676_s21 = scalar_lea.sflag [#allocation5], %s3675_s29 }
 0xc96   : > { %p4653_p10 = pneg %p4652_p8 }
 0xc98   : > { %4986 = dma.done.wait (%p4653_p10), %s3676_s21, 128  }
 0xc99   : > { %4988 = vsyncadd (%p4653_p10), %s3676_s21, 4294967168  ;;  %s3685_s22 = scalar_lea.sflag [#allocation7], %s3675_s29 }
 0xc9a   : > { %4990 = dma.done.wait (%p4653_p10), %s3685_s22, 16  }
 0xc9b   : > { %4992 = vsyncadd (%p4653_p10), %s3685_s22, 4294967280  ;;  %s41_s0 = sadd.s32 1, %s5945_s0   ;;  %s5948_s5 = sld [smem:[#allocation11_spill]] }
 0xc9c   : > { %p38_p11 = scmp.ge.s32.totalorder %s41_s0, 6   ;;  %s5949_s26 = sld [smem:[#allocation12_spill]] }
 0xc9d   : > { %s5950_s27 = sld [smem:[#allocation22_spill]] }
 0xc9e   : > { %s5951_s28 = sld [smem:[#allocation15_spill]]  ;;  %40 = sbr.rel (!%p38_p11) target bundleno = 32 (0x20), region = 226 }
 0xc9f   : > { %s5952_s6 = sld [smem:[#allocation16_spill]] }
 0xca0   : > { %s5953_s2 = sld [smem:[#allocation18_spill]] }
 0xca1   : > { %s5954_s29 = sld [smem:[#allocation20_spill]] }
 0xca3   :  { %3689 = vsyncpa [#allocation5], 1 }
 0xca4   :  { %3691 = vsyncpa [#allocation5 + $0x1], 1 }
 0xca5   :  { %3692 = vsyncpa [#allocation7], 1 }
 0xca6   :  { %3694 = vsyncpa [#allocation7 + $0x1], 1 }

</bundles_post_ra>
